<compile_context>
chip_gen: v7x
topology: tpu7x:2x2x1
jax: 0.10.0
libtpu: 0.0.40
codegen_flags: <defaults>
</compile_context>

<pallas_src>
import functools

import jax
import jax.numpy as jnp
from jax import lax
from jax.experimental import pallas as pl
from jax.experimental.pallas import tpu as pltpu


def _scm_kernel(feat_ref, cam_ref, w_ref, b_ref, out_ref, fpT_ref, *, tq, tk, nk):
    """One (batch, query-tile) grid step.

    feat_ref: (1, C, N) f32   channels-first; N = H*W stays the lane dim
    cam_ref : (1, K, N) f32
    w_ref   : (Cp, C)  f32    1x1-conv weight
    b_ref   : (Cp, 1)  f32    1x1-conv bias
    out_ref : (1, K, tq) f32  query-tile slice of the augmented CAM
    fpT_ref : (Cp, N)  f32    VMEM scratch: projected features, N last
    """
    cp = fpT_ref.shape[0]
    q0 = pl.multiple_of(pl.program_id(1) * tq, tq)

    w = w_ref[...]                                   # (Cp, C)
    b = b_ref[...]                                   # (Cp, 1)

    # --- 1x1 conv as a matmul, keeping N as the lane dimension (f32, like the
    #     module's conv). fpT = w @ feat + b -> (Cp, N).
    fpT_ref[...] = lax.dot_general(
        w, feat_ref[0], (((1,), (0,)), ((), ())),
        preferred_element_type=jnp.float32) + b

    fpT_bf = fpT_ref[...].astype(jnp.bfloat16)       # bf16 MXU operand copy

    # --- class_term = cam_reshape @ feat_proj -> (K, Cp), contracted over N.
    class_term = lax.dot_general(
        cam_ref[0].astype(jnp.bfloat16), fpT_bf, (((1,), (1,)), ((), ())),
        preferred_element_type=jnp.float32)          # (K, Cp) f32

    # Query tile of the projected features; one tiny (Cp, tq) transpose per
    # grid step so every matmul below is a standard A@B or A@B^T form.
    fpT_q = fpT_ref[:, pl.ds(q0, tq)]                # (Cp, tq) f32
    fp_q_bf = jnp.transpose(fpT_q).astype(jnp.bfloat16)   # (tq, Cp)

    # --- flash-style online softmax over key tiles (no (N, N) materialization).
    def body(j, carry):
        m_run, l_run, acc = carry                    # (tq,1),(tq,1),(tq,Cp) f32
        k0 = pl.multiple_of(j * tk, tk)
        fpT_k_bf = fpT_ref[:, pl.ds(k0, tk)].astype(jnp.bfloat16)   # (Cp, tk)

        # sim tile: (tq, tk) = fp_q @ fpT_k (contract Cp), f32 accumulate.
        s = lax.dot_general(fp_q_bf, fpT_k_bf, (((1,), (0,)), ((), ())),
                            preferred_element_type=jnp.float32)
        m_new = jnp.maximum(m_run, jnp.max(s, axis=-1, keepdims=True))
        alpha = jnp.exp(m_run - m_new)
        p = jnp.exp(s - m_new)                       # unnormalized, f32 exp (EUP)
        l_new = alpha * l_run + jnp.sum(p, axis=-1, keepdims=True)
        # acc += p @ fp_k -> (tq, Cp)  (A @ B^T against fpT_k).
        acc_new = alpha * acc + lax.dot_general(
            p.astype(jnp.bfloat16), fpT_k_bf, (((1,), (1,)), ((), ())),
            preferred_element_type=jnp.float32)
        return m_new, l_new, acc_new

    m0 = jnp.full((tq, 1), -jnp.inf, dtype=jnp.float32)
    l0 = jnp.zeros((tq, 1), dtype=jnp.float32)
    a0 = jnp.zeros((tq, cp), dtype=jnp.float32)
    _, l_run, acc = lax.fori_loop(0, nk, body, (m0, l0, a0), unroll=(nk <= 8))

    # Deferred softmax normalization on the (tq, Cp) result, not the (N, N) matrix.
    pix_q = acc * pl.reciprocal(l_run, approx=True)  # (tq, Cp) f32

    # aug = class_term @ pixel_term^T -> (K, tq); output stays lane-dense in tq.
    aug = lax.dot_general(
        class_term.astype(jnp.bfloat16), pix_q.astype(jnp.bfloat16),
        (((1,), (1,)), ((), ())), preferred_element_type=jnp.float32)

    out_ref[0] = cam_ref[0, :, pl.ds(q0, tq)] + aug


def _pick_tile(n, candidates=(512, 256, 128)):
    for t in candidates:
        if n % t == 0:
            return t
    return n   # fallback: untiled (correct, just not lane-optimal)


def semantic_correlation(feat_nchw, cam_nchw, w_conv, bias, *, tq=None, tk=None):
    """Forward of SemanticCorrelationModule.

    feat_nchw: (B, C, H, W) f32, cam_nchw: (B, K, H, W) f32,
    w_conv: (Cp, C) f32 (proj_feat weight, Cp = C//4), bias: (Cp,) f32.
    Returns cam + aug_cam with shape (B, K, H, W), f32.
    """
    B, C, H, W = feat_nchw.shape
    K = cam_nchw.shape[1]
    N = H * W
    Cp = w_conv.shape[0]

    # Channels-first flatten only: N stays the last (lane) dim -> no host transpose.
    feat = feat_nchw.reshape(B, C, N)
    cam = cam_nchw.reshape(B, K, N)
    bias2d = bias.reshape(Cp, 1)

    tq = tq if tq is not None else _pick_tile(N)
    tk = tk if tk is not None else _pick_tile(N)
    assert N % tq == 0 and N % tk == 0, "query/key tiles must divide H*W"
    nq, nk = N // tq, N // tk

    kernel = functools.partial(_scm_kernel, tq=tq, tk=tk, nk=nk)

    # Cost hint: sim + pixel_term dominate flops; exp is N^2 per batch (EUP-heavy).
    flops = B * (4 * N * N * Cp + 2 * K * Cp * N
                 + nq * (2 * C * Cp * N + 2 * K * Cp * N))
    transcendentals = B * (N * N + N * nk)
    bytes_accessed = 4 * (B * (C * N + 2 * K * N) + Cp * C + Cp)
    cost = pl.CostEstimate(flops=int(flops), transcendentals=int(transcendentals),
                           bytes_accessed=int(bytes_accessed))

    # VMEM budget: double-buffered blocks + fpT scratch + in-kernel (tq, tk) tiles.
    block_bytes = 4 * (C * N + K * N + Cp * C + Cp + K * tq)
    working = 2 * block_bytes + 4 * Cp * N + 6 * 4 * tq * tk + (8 << 20)
    vmem_limit = int(min(max(working, 32 << 20), 48 << 20))  # fits v7x's 64 MiB

    out = pl.pallas_call(
        kernel,
        out_shape=jax.ShapeDtypeStruct((B, K, N), jnp.float32),
        grid_spec=pltpu.PrefetchScalarGridSpec(
            num_scalar_prefetch=0,
            grid=(B, nq),
            in_specs=[
                pl.BlockSpec((1, C, N), lambda b, q: (b, 0, 0)),
                pl.BlockSpec((1, K, N), lambda b, q: (b, 0, 0)),
                pl.BlockSpec((Cp, C), lambda b, q: (0, 0)),
                pl.BlockSpec((Cp, 1), lambda b, q: (0, 0)),
            ],
            out_specs=pl.BlockSpec((1, K, tq), lambda b, q: (b, 0, q)),
            scratch_shapes=[pltpu.VMEM((Cp, N), jnp.float32)],
        ),
        compiler_params=pltpu.CompilerParams(
            dimension_semantics=("parallel", "parallel"),
            vmem_limit_bytes=vmem_limit),
        cost_estimate=cost,
    )(feat, cam, w_conv, bias2d)

    return out.reshape(B, K, H, W)


def _reference_forward(feat, cam, w_conv, bias, *, mxu_dtype=jnp.float32):
    """Pure-JAX reference of the module. mxu_dtype=bfloat16 mirrors the kernel's
    bf16 MXU operands (with f32 accumulation) for a tight structural check."""
    B, C, H, W = feat.shape
    K = cam.shape[1]
    N = H * W
    x = feat.reshape(B, C, N)
    camf = cam.reshape(B, K, N)

    fp = jnp.einsum('bcn,oc->bno', x, w_conv,
                    preferred_element_type=jnp.float32) + bias         # (B,N,Cp)
    fp_m = fp.astype(mxu_dtype)
    cam_m = camf.astype(mxu_dtype)
    class_term = jnp.einsum('bkn,bno->bko', cam_m, fp_m,
                            preferred_element_type=jnp.float32)
    sim = jnp.einsum('bno,bmo->bnm', fp_m, fp_m,
                     preferred_element_type=jnp.float32)
    p = jax.nn.softmax(sim, axis=-1)
    pixel = jnp.einsum('bnm,bmo->bno', p.astype(mxu_dtype), fp_m,
                       preferred_element_type=jnp.float32)
    aug = jnp.einsum('bko,bno->bkn', class_term.astype(mxu_dtype),
                     pixel.astype(mxu_dtype),
                     preferred_element_type=jnp.float32)
    return (camf + aug).reshape(B, K, H, W)


if __name__ == "__main__":
    B, C, H, W = 2, 32, 16, 16
    num_classes = 8
    Cp = C // 4
    N = H * W

    key = jax.random.PRNGKey(0)
    k_feat, k_cam, k_w, k_b = jax.random.split(key, 4)

    feat = jax.random.normal(k_feat, (B, C, H, W), dtype=jnp.float32)
    cam = jax.random.normal(k_cam, (B, num_classes, H, W), dtype=jnp.float32)

    # proj_feat = nn.Conv2d(C, C//4, 1): weight (Cp, C, 1, 1) -> (Cp, C), bias (Cp,)
    w_conv = (jax.random.normal(k_w, (Cp, C), dtype=jnp.float32)
              * (1.0 / jnp.sqrt(C)))
    bias = jax.random.normal(k_b, (Cp,), dtype=jnp.float32) * 0.01

    # tq/tk = 128 so the toy run (N = 256) exercises both the query grid axis
    # (2 tiles) and the multi-tile online-softmax key loop (2 tiles).
    out = semantic_correlation(feat, cam, w_conv, bias, tq=128, tk=128)
    out = jax.block_until_ready(out)
    assert out.shape == (B, num_classes, H, W)

    # Structural correctness check against a reference that mirrors the kernel's
    # bf16 MXU casts; tolerance only absorbs tiling / accumulation-order /
    # approx-reciprocal differences.
    ref = _reference_forward(feat, cam, w_conv, bias, mxu_dtype=jnp.bfloat16)
    err = float(jnp.max(jnp.abs(out - ref)) / (jnp.max(jnp.abs(ref)) + 1e-6))
    assert err < 5e-2, f"kernel/reference mismatch: normalized max err = {err}"

    print("KERNEL_OK")
</pallas_src>

<mosaic_0001>
module attributes {stable_mosaic.version = 11 : i64} {
  func.func @_scm_kernel(%arg0: i32, %arg1: i32, %arg2: memref<1x32x256xf32, #tpu.memory_space<vmem>>, %arg3: memref<1x8x256xf32, #tpu.memory_space<vmem>>, %arg4: memref<8x32xf32, #tpu.memory_space<vmem>>, %arg5: memref<8x1xf32, #tpu.memory_space<vmem>>, %arg6: memref<1x8x128xf32, #tpu.memory_space<vmem>>, %arg7: memref<8x256xf32, #tpu.memory_space<vmem>>) attributes {dimension_semantics = [#tpu.dimension_semantics<parallel>, #tpu.dimension_semantics<parallel>], iteration_bounds = array<i64: 2, 2>, scalar_prefetch = 0 : i64, scratch_operands = 1 : i64, tpu.core_type = #tpu.core_type<tc>, window_params = [{transform_indices = @transform_0, window_bounds = array<i64: 1, 32, 256>}, {transform_indices = @transform_1, window_bounds = array<i64: 1, 8, 256>}, {pipeline_mode = #tpu.pipeline_mode<synchronous>, transform_indices = @transform_2, window_bounds = array<i64: 8, 32>}, {pipeline_mode = #tpu.pipeline_mode<synchronous>, transform_indices = @transform_3, window_bounds = array<i64: 8, 1>}, {transform_indices = @transform_4, window_bounds = array<i64: 1, 8, 128>}]} {
    %c128_i32 = arith.constant 128 : i32
    %0 = arith.muli %arg1, %c128_i32 : i32
    %1 = tpu.assume_multiple %0, 128 : i32
    %c0 = arith.constant 0 : index
    %c0_0 = arith.constant 0 : index
    %2 = vector.load %arg4[%c0, %c0_0] : memref<8x32xf32, #tpu.memory_space<vmem>>, vector<8x32xf32>
    %c0_1 = arith.constant 0 : index
    %c0_2 = arith.constant 0 : index
    %3 = vector.load %arg5[%c0_1, %c0_2] : memref<8x1xf32, #tpu.memory_space<vmem>>, vector<8x1xf32>
    %c0_3 = arith.constant 0 : index
    %c0_4 = arith.constant 0 : index
    %c0_5 = arith.constant 0 : index
    %4 = vector.load %arg2[%c0_3, %c0_4, %c0_5] : memref<1x32x256xf32, #tpu.memory_space<vmem>>, vector<1x32x256xf32>
    %5 = vector.shape_cast %4 : vector<1x32x256xf32> to vector<32x256xf32>
    %cst = arith.constant dense<0.000000e+00> : vector<8x256xf32>
    %6 = tpu.matmul %2, %5, %cst {dimension_numbers = #tpu.dot_dimension_numbers<[1], [0], [0], [1], [0, 0, 1, 1], [], []>} : vector<8x32xf32>, vector<32x256xf32>, vector<8x256xf32> -> vector<8x256xf32>
    %7 = vector.broadcast %3 : vector<8x1xf32> to vector<8x256xf32>
    %8 = arith.addf %6, %7 : vector<8x256xf32>
    %c0_6 = arith.constant 0 : index
    %c0_7 = arith.constant 0 : index
    %9 = vector.load %arg7[%c0_6, %c0_7] : memref<8x256xf32, #tpu.memory_space<vmem>>, vector<8x256xf32>
    tpu.vector_store %arg7[%c0_6, %c0_7], %8 {strides = array<i32>} : memref<8x256xf32, #tpu.memory_space<vmem>>, vector<8x256xf32>,
    %c0_8 = arith.constant 0 : index
    %c0_9 = arith.constant 0 : index
    %10 = vector.load %arg7[%c0_8, %c0_9] : memref<8x256xf32, #tpu.memory_space<vmem>>, vector<8x256xf32>
    %11 = arith.truncf %10 : vector<8x256xf32> to vector<8x256xbf16>
    %c0_10 = arith.constant 0 : index
    %c0_11 = arith.constant 0 : index
    %c0_12 = arith.constant 0 : index
    %12 = vector.load %arg3[%c0_10, %c0_11, %c0_12] : memref<1x8x256xf32, #tpu.memory_space<vmem>>, vector<1x8x256xf32>
    %13 = vector.shape_cast %12 : vector<1x8x256xf32> to vector<8x256xf32>
    %14 = arith.truncf %13 : vector<8x256xf32> to vector<8x256xbf16>
    %cst_13 = arith.constant dense<0.000000e+00> : vector<8x8xf32>
    %15 = tpu.matmul %14, %11, %cst_13 {dimension_numbers = #tpu.dot_dimension_numbers<[1], [1], [0], [0], [0, 0, 1, 0], [], []>} : vector<8x256xbf16>, vector<8x256xbf16>, vector<8x8xf32> -> vector<8x8xf32>
    %c0_14 = arith.constant 0 : index
    %16 = arith.index_cast %1 : i32 to index
    %17 = vector.load %arg7[%c0_14, %16] : memref<8x256xf32, #tpu.memory_space<vmem>>, vector<8x128xf32>
    %18 = tpu.transpose %17, [1, 0] : vector<8x128xf32> -> vector<128x8xf32>
    %19 = arith.truncf %18 : vector<128x8xf32> to vector<128x8xbf16>
    %cst_15 = arith.constant 0xFF800000 : f32
    %20 = vector.broadcast %cst_15 : f32 to vector<128x1xf32>
    %cst_16 = arith.constant 0.000000e+00 : f32
    %21 = vector.broadcast %cst_16 : f32 to vector<128x1xf32>
    %cst_17 = arith.constant 0.000000e+00 : f32
    %22 = vector.broadcast %cst_17 : f32 to vector<128x8xf32>
    %c0_i32 = arith.constant 0 : i32
    %c128_i32_18 = arith.constant 128 : i32
    %23 = arith.muli %c0_i32, %c128_i32_18 : i32
    %24 = tpu.assume_multiple %23, 128 : i32
    %c0_19 = arith.constant 0 : index
    %25 = arith.index_cast %24 : i32 to index
    %26 = vector.load %arg7[%c0_19, %25] : memref<8x256xf32, #tpu.memory_space<vmem>>, vector<8x128xf32>
    %27 = arith.truncf %26 : vector<8x128xf32> to vector<8x128xbf16>
    %cst_20 = arith.constant dense<0.000000e+00> : vector<128x128xf32>
    %28 = tpu.matmul %19, %27, %cst_20 {dimension_numbers = #tpu.dot_dimension_numbers<[1], [0], [0], [1], [0, 0, 1, 1], [], []>} : vector<128x8xbf16>, vector<8x128xbf16>, vector<128x128xf32> -> vector<128x128xf32>
    %cst_21 = arith.constant dense<0xFF800000> : vector<128xf32>
    %29 = vector.multi_reduction <maximumf>, %28, %cst_21 [1] : vector<128x128xf32> to vector<128xf32>
    %30 = vector.shape_cast %29 : vector<128xf32> to vector<128x1xf32>
    %31 = arith.maximumf %20, %30 : vector<128x1xf32>
    %32 = arith.subf %20, %31 : vector<128x1xf32>
    %33 = math.exp %32 : vector<128x1xf32>
    %34 = vector.broadcast %31 : vector<128x1xf32> to vector<128x128xf32>
    %35 = arith.subf %28, %34 : vector<128x128xf32>
    %36 = math.exp %35 : vector<128x128xf32>
    %37 = arith.mulf %33, %21 : vector<128x1xf32>
    %cst_22 = arith.constant dense<0.000000e+00> : vector<128xf32>
    %38 = vector.multi_reduction <add>, %36, %cst_22 [1] : vector<128x128xf32> to vector<128xf32>
    %39 = vector.shape_cast %38 : vector<128xf32> to vector<128x1xf32>
    %40 = arith.addf %37, %39 : vector<128x1xf32>
    %41 = vector.broadcast %33 : vector<128x1xf32> to vector<128x8xf32>
    %42 = arith.mulf %41, %22 : vector<128x8xf32>
    %43 = arith.truncf %36 : vector<128x128xf32> to vector<128x128xbf16>
    %cst_23 = arith.constant dense<0.000000e+00> : vector<128x8xf32>
    %44 = tpu.matmul %43, %27, %cst_23 {dimension_numbers = #tpu.dot_dimension_numbers<[1], [1], [0], [0], [0, 0, 1, 0], [], []>} : vector<128x128xbf16>, vector<8x128xbf16>, vector<128x8xf32> -> vector<128x8xf32>
    %45 = arith.addf %42, %44 : vector<128x8xf32>
    %c1_i32 = arith.constant 1 : i32
    %c128_i32_24 = arith.constant 128 : i32
    %46 = arith.muli %c1_i32, %c128_i32_24 : i32
    %47 = tpu.assume_multiple %46, 128 : i32
    %c0_25 = arith.constant 0 : index
    %48 = arith.index_cast %47 : i32 to index
    %49 = vector.load %arg7[%c0_25, %48] : memref<8x256xf32, #tpu.memory_space<vmem>>, vector<8x128xf32>
    %50 = arith.truncf %49 : vector<8x128xf32> to vector<8x128xbf16>
    %cst_26 = arith.constant dense<0.000000e+00> : vector<128x128xf32>
    %51 = tpu.matmul %19, %50, %cst_26 {dimension_numbers = #tpu.dot_dimension_numbers<[1], [0], [0], [1], [0, 0, 1, 1], [], []>} : vector<128x8xbf16>, vector<8x128xbf16>, vector<128x128xf32> -> vector<128x128xf32>
    %cst_27 = arith.constant dense<0xFF800000> : vector<128xf32>
    %52 = vector.multi_reduction <maximumf>, %51, %cst_27 [1] : vector<128x128xf32> to vector<128xf32>
    %53 = vector.shape_cast %52 : vector<128xf32> to vector<128x1xf32>
    %54 = arith.maximumf %31, %53 : vector<128x1xf32>
    %55 = arith.subf %31, %54 : vector<128x1xf32>
    %56 = math.exp %55 : vector<128x1xf32>
    %57 = vector.broadcast %54 : vector<128x1xf32> to vector<128x128xf32>
    %58 = arith.subf %51, %57 : vector<128x128xf32>
    %59 = math.exp %58 : vector<128x128xf32>
    %60 = arith.mulf %56, %40 : vector<128x1xf32>
    %cst_28 = arith.constant dense<0.000000e+00> : vector<128xf32>
    %61 = vector.multi_reduction <add>, %59, %cst_28 [1] : vector<128x128xf32> to vector<128xf32>
    %62 = vector.shape_cast %61 : vector<128xf32> to vector<128x1xf32>
    %63 = arith.addf %60, %62 : vector<128x1xf32>
    %64 = vector.broadcast %56 : vector<128x1xf32> to vector<128x8xf32>
    %65 = arith.mulf %64, %45 : vector<128x8xf32>
    %66 = arith.truncf %59 : vector<128x128xf32> to vector<128x128xbf16>
    %cst_29 = arith.constant dense<0.000000e+00> : vector<128x8xf32>
    %67 = tpu.matmul %66, %50, %cst_29 {dimension_numbers = #tpu.dot_dimension_numbers<[1], [1], [0], [0], [0, 0, 1, 0], [], []>} : vector<128x128xbf16>, vector<8x128xbf16>, vector<128x8xf32> -> vector<128x8xf32>
    %68 = arith.addf %65, %67 : vector<128x8xf32>
    %c2_i32 = arith.constant 2 : i32
    %69 = tpu.reciprocal %63 {approx = true} : vector<128x1xf32> -> vector<128x1xf32>
    %70 = vector.broadcast %69 : vector<128x1xf32> to vector<128x8xf32>
    %71 = arith.mulf %68, %70 : vector<128x8xf32>
    %72 = arith.truncf %15 : vector<8x8xf32> to vector<8x8xbf16>
    %73 = arith.truncf %71 : vector<128x8xf32> to vector<128x8xbf16>
    %cst_30 = arith.constant dense<0.000000e+00> : vector<8x128xf32>
    %74 = tpu.matmul %72, %73, %cst_30 {dimension_numbers = #tpu.dot_dimension_numbers<[1], [1], [0], [0], [0, 0, 1, 0], [], []>} : vector<8x8xbf16>, vector<128x8xbf16>, vector<8x128xf32> -> vector<8x128xf32>
    %c0_31 = arith.constant 0 : index
    %c0_32 = arith.constant 0 : index
    %75 = arith.index_cast %1 : i32 to index
    %76 = vector.load %arg3[%c0_31, %c0_32, %75] : memref<1x8x256xf32, #tpu.memory_space<vmem>>, vector<1x8x128xf32>
    %77 = vector.shape_cast %76 : vector<1x8x128xf32> to vector<8x128xf32>
    %78 = arith.addf %77, %74 : vector<8x128xf32>
    %c0_33 = arith.constant 0 : index
    %c0_34 = arith.constant 0 : index
    %c0_35 = arith.constant 0 : index
    %79 = vector.load %arg6[%c0_33, %c0_34, %c0_35] : memref<1x8x128xf32, #tpu.memory_space<vmem>>, vector<1x8x128xf32>
    %80 = vector.shape_cast %79 : vector<1x8x128xf32> to vector<8x128xf32>
    %81 = vector.shape_cast %78 : vector<8x128xf32> to vector<1x8x128xf32>
    tpu.vector_store %arg6[%c0_33, %c0_34, %c0_35], %81 {strides = array<i32>} : memref<1x8x128xf32, #tpu.memory_space<vmem>>, vector<1x8x128xf32>,
    return
  }
  func.func @transform_0(%arg0: i32, %arg1: i32) -> (i32, i32, i32) {
    %c0_i32 = arith.constant 0 : i32
    %c0_i32_0 = arith.constant 0 : i32
    %c0_i32_1 = arith.constant 0 : i32
    return %arg0, %c0_i32, %c0_i32_0 : i32, i32, i32
  }
  func.func @transform_1(%arg0: i32, %arg1: i32) -> (i32, i32, i32) {
    %c0_i32 = arith.constant 0 : i32
    %c0_i32_0 = arith.constant 0 : i32
    %c0_i32_1 = arith.constant 0 : i32
    return %arg0, %c0_i32, %c0_i32_0 : i32, i32, i32
  }
  func.func @transform_2(%arg0: i32, %arg1: i32) -> (i32, i32) {
    %c0_i32 = arith.constant 0 : i32
    %c0_i32_0 = arith.constant 0 : i32
    %c0_i32_1 = arith.constant 0 : i32
    return %c0_i32, %c0_i32_0 : i32, i32
  }
  func.func @transform_3(%arg0: i32, %arg1: i32) -> (i32, i32) {
    %c0_i32 = arith.constant 0 : i32
    %c0_i32_0 = arith.constant 0 : i32
    %c0_i32_1 = arith.constant 0 : i32
    return %c0_i32, %c0_i32_0 : i32, i32
  }
  func.func @transform_4(%arg0: i32, %arg1: i32) -> (i32, i32, i32) {
    %c0_i32 = arith.constant 0 : i32
    %c0_i32_0 = arith.constant 0 : i32
    return %arg0, %c0_i32, %arg1 : i32, i32, i32
  }
}

</mosaic_0001>

<bundles_post_ra>
// kernel: tpu_custom_call.1
= control target key start
LH: loop header
LB: loop body
LE: loop exit
PB: predicated region body
PF: predicated region fallthrough
CT: control target
= control target key end

     0   :  { %s3207_s0 = inlined_call_operand.hbm [shape: f32[2,32,256], index: 0, kind: input, shape index: {}]   ;;  %s3208_s1 = inlined_call_operand.hbm [shape: f32[2,8,256], index: 1, kind: input, shape index: {}]   ;;  %s3209_s2 = inlined_call_operand.vmem [shape: f32[8,32], index: 2, kind: input, shape index: {}]   ;;  %s3210_s3 = inlined_call_operand.vmem [shape: f32[8,1], index: 3, kind: input, shape index: {}]   ;;  %s3211_s4 = inlined_call_operand.hbm [shape: f32[2,8,256], index: 4, kind: output, shape index: {}]  }
   0x1   :  { %3220 = sst [smem:[#allocation28_spill]] %s3207_s0 }
   0x2   :  { %9 = vsyncpa [#allocation4], 0 }
   0x3   :  { %11 = vsyncpa [#allocation4 + $0x1], 0 }
   0x4   :  { %12 = vsyncpa [#allocation7], 0 }
   0x5   :  { %14 = vsyncpa [#allocation7 + $0x1], 0 }
   0x6   :  { %15 = vsyncpa [#allocation5], 0 }
   0x7   :  { %17 = vsyncpa [#allocation5 + $0x1], 0  ;;  %s2269_s15 = smov 0   ;;  %s2271_s16 = smov 0  }
   0x8   :  { %s2273_s17 = smov 0   ;;  %s2275_s18 = smov 0  }
   0x9   :  { %s2277_s19 = smov 0   ;;  %s2279_s20 = smov 0  }
   0xa   :  { %s2281_s21 = smov 0   ;;  %s2283_s22 = smov 0  }
   0xb   :  { %s2285_s23 = smov 0   ;;  %s2287_s24 = smov 0  }
   0xc   :  { %s2289_s25 = smov 0  }
   0xd LB: > { %3221 = sst [smem:[#allocation12_spill]] %s2214_s20  ;;  %s1583_s26 = sadd.s32 4294967295, %s2234_s25   ;;  %s2234_s25 = sphi %s2289_s25, %s23_s25   ;;  %s2230_s24 = sphi %s2287_s24, %s3274_s24   ;;  %s2226_s23 = sphi %s2285_s23, %s3266_s23   ;;  %s2222_s22 = sphi %s2283_s22, %s3273_s22   ;;  %s2218_s21 = sphi %s2281_s21, %s3265_s21   ;;  %s2214_s20 = sphi %s2279_s20, %s3264_s20   ;;  %s2210_s19 = sphi %s2277_s19, %s3272_s19   ;;  %s2206_s18 = sphi %s2275_s18, %s3271_s18   ;;  %s2202_s17 = sphi %s2273_s17, %s3270_s17   ;;  %s2198_s16 = sphi %s2271_s16, %s3269_s16   ;;  %s2194_s15 = sphi %s2269_s15, %s3268_s15  }
   0xe   : > { %3222 = sst [smem:[#allocation13_spill]] %s2226_s23  ;;  %s1584_s27 = sadd.s32 4294967294, %s2234_s25  }
   0xf   : > { %s32_s28 = sadd.s32 1, %s2226_s23  ;;  %s35_s29 = sadd.s32 1, %s2230_s24 }
  0x10   : > { %p33_p0 = scmp.ge.s32.totalorder %s32_s28, 2  ;;  %s42_s30 = sadd.s32 1, %s2214_s20 }
  0x11   : > { %p49_p1 = scmp.ne.s32.totalorder %s2214_s20, %s2210_s19  ;;  %p50_p2 = scmp.eq.s32.totalorder %s2234_s25, 0 }
  0x12   : > { %s3276_s28 = smov (%p33_p0, %s32_s28), 0  ;;  %s3278_s29 = smov (!%p33_p0, %s35_s29), %s2230_s24 }
  0x13   : > { %3223 = sst [smem:[#allocation14_spill]] %s3276_s28  ;;  %p2333_p3 = por %p50_p2, %p49_p1 }
  0x14   : > { %p55_p4 = scmp.ne.s32.totalorder %s2210_s19, %s2206_s18  ;;  %p37_p5 = scmp.ge.s32.totalorder %s3278_s29, 2 }
  0x15   : > { %p56_p6 = scmp.eq.s32.totalorder %s1583_s26, 0  ;;  %s134_s6 = ssub.s32 %s2226_s23, %s3276_s28 }
  0x16   : > { %s138_s7 = sadd.s32 1, %s2202_s17  ;;  %s3280_s29 = smov (%p37_p5, %s3278_s29), 0 }
  0x17   : > { %3225 = sst [smem:[#allocation15_spill]] %s3280_s29  ;;  %p2343_p7 = por %p56_p6, %p55_p4 }
  0x18   : > { %p148_p8 = scmp.ne.s32.totalorder %s2202_s17, %s2198_s16  ;;  %s39_s9 = ssub.s32 %s2230_s24, %s3280_s29 }
  0x19   : > { %s3226_s8 = scalar_select %p2343_p7, 1, 0 }
  0x1a   : > { %p149_p9 = scmp.eq.s32.totalorder %s1583_s26, 3  ;;  %p40_p10 = scmp.eq.s32.totalorder %s39_s9, 0 }
  0x1b   : > { %s135_s10 = sor.u32 %s134_s6, %s39_s9  ;;  %p154_p13 = scmp.ne.s32.totalorder %s2198_s16, %s2194_s15 }
  0x1c   : > { %p136_p11 = scmp.eq.s32.totalorder %s135_s10, 0  ;;  %p2351_p12 = por %p149_p9, %p148_p8 }
  0x1d   : > { %s2356_s12 = scalar_select %p40_p10, %s2214_s20, %s42_s30  }
  0x1e   : > { %s3227_s11 = scalar_select %p2351_p12, 1, 0 }
  0x1f   : > { %3228 = sst [smem:[#allocation16_spill]] %s2356_s12  ;;  %p155_p0 = scmp.eq.s32.totalorder %s1584_s27, 3 }
  0x20   : > { %s2359_s13 = scalar_select %p136_p11, %s2202_s17, %s138_s7  }
  0x21   : > { %p1792_p1 = scmp.lt.s32.totalorder %s2234_s25, 4  ;;  %p2364_p2 = por %p155_p0, %p154_p13 }
  0x22   : > { %s2369_s18 = sand.u32 1, %s2214_s20   ;;  %s1623_s6 = sshll.u32 %s2230_s24, 10 }
  0x23   : > { %s3229_s14 = scalar_select %p2364_p2, 1, 0 }
  0x24   : > { %s1587_s26 = sshll.u32 %s2369_s18, 6  ;;  %s3230_s0 = sld [smem:[#allocation28_spill]] }
  0x25   : > { %s185_s27 = scalar_lea.vmem [#allocation3], %s1587_s26  ;;  %p2382_p4 = pnand %p1792_p1, %p2333_p3 }
  0x26   : > { %s192_s7 = sshll.u32 %s185_s27, 4  ;;  %s2378_s7 = int_to_ptr.vmem [resolvable:$true] %s192_s7 }
  0x27   : > { %p2050_p8 = pneg %p2382_p4 }
  0x2a   : > { %s2376_s30 = scalar_lea.hbm %s3230_s0, %s1623_s6  ;;  %s2053_s5 = scalar_lea.hbm %s3230_s0, 2048 }
  0x2b   : > { %s2048_s9 = scalar_lea.hbm %s2376_s30, 1024  ;;  %p2054_p3 = scmp.lt.u32.totalorder %s2376_s30, %s3230_s0 }
  0x2c   : > { %p2049_p6 = scmp.ne.s32.totalorder %s2376_s30, %s2048_s9  ;;  %p2055_p11 = scmp.lt.u32.totalorder %s2053_s5, %s2048_s9 }
  0x2d   : > { %p2057_p0 = scmp.lt.u32.totalorder %s2048_s9, %s2376_s30 }
  0x2e   : > { %p2051_p9 = pnand %p2050_p8, %p2049_p6  ;;  %p2056_p13 = por %p2055_p11, %p2054_p3 }
  0x30   : > { %p2052_p10 = pneg %p2051_p9  ;;  %p2058_p1 = por %p2057_p0, %p2056_p13 }
  0x32   : > { %p2059_p5 = pnand %p2058_p1, %p2052_p10 }
  0x34   : > { %2062 = shalt.err (!%p2059_p5)
}
  0x35   : > { %s2063_s28 = scalar_lea.vmem %s2378_s7, 1024  ;;  %s2236_s26 = smov [#allocation3]  }
  0x36   : > { %p2064_p6 = scmp.ne.s32.totalorder %s2378_s7, %s2063_s28  ;;  %s2068_s6 = sshll.u32 %s2236_s26, 4  ;;  %s2069_s6 = int_to_ptr.vmem [resolvable:$false] %s2068_s6 }
  0x37   : > { %s2070_s10 = scalar_lea.vmem %s2069_s6, 2048  ;;  %p2071_p12 = scmp.lt.s32.totalorder %s2378_s7, %s2069_s6 }
  0x38   : > { %p2066_p9 = pnand %p2064_p6, %p2050_p8  ;;  %p2072_p3 = scmp.lt.s32.totalorder %s2070_s10, %s2063_s28 }
  0x3a   : > { %p2067_p2 = pneg %p2066_p9  ;;  %p2073_p11 = por %p2072_p3, %p2071_p12 }
  0x3c   : > { %p2074_p13 = pnand %p2073_p11, %p2067_p2 }
  0x3e   : > { %2077 = shalt.err (!%p2074_p13)
}
  0x3f   : > { %s2237_s9 = smov 256   ;;  %s2238_s5 = smov 16  }
  0x40   : > { %s3232_s27 = scalar_lea.sflag [#allocation4], %s2369_s18  ;;  %p219_p5 = scmp.lt.s32.totalorder %s2234_s25, 5 }
  0x41   : > { %1784 = dma.hbm_to_vmem [thread:$0]  (!%p2382_p4), %s2376_s30, 1024, %s2378_s7, %s3232_s27, %s2237_s9, %s2237_s9, %s2238_s5  }
  0x42   : > { %s1590_s28 = sshll.u32 %s2369_s18, 4  ;;  %s1624_s26 = sshll.u32 %s2230_s24, 8 }
  0x43   : > { %p3233_p12 = scmp.ge.s32.totalorder %s2234_s25, 1  ;;  %s2427_s23 = scalar_lea.hbm %s3208_s1, %s1624_s26 }
  0x44   : > { %s206_s12 = scalar_lea.vmem [#allocation6], %s1590_s28  ;;  %s203_s30 = scalar_lea.sflag [#allocation7], %s2369_s18 }
  0x45   : > { %p2420_p2 = pnand %p3233_p12, %p219_p5  ;;  %s214_s20 = sshll.u32 %s206_s12, 4  ;;  %s215_s20 = int_to_ptr.vmem [resolvable:$true] %s214_s20 }
  0x46   : > { %s2078_s7 = scalar_lea.hbm %s2427_s23, 256  ;;  %s2083_s0 = scalar_lea.hbm %s3208_s1, 512 }
  0x47   : > { %s3234_s6 = scalar_select %p2420_p2, 1, 0 }
  0x48   : > { %p2079_p10 = scmp.ne.s32.totalorder %s2427_s23, %s2078_s7  ;;  %p2084_p6 = scmp.lt.u32.totalorder %s2427_s23, %s3208_s1 }
  0x49   : > { %p2085_p9 = scmp.lt.u32.totalorder %s2083_s0, %s2078_s7  ;;  %p2087_p11 = scmp.lt.u32.totalorder %s2078_s7, %s2427_s23 }
  0x4a   : > { %p2081_p0 = pnand %p2079_p10, %p2050_p8 }
  0x4b   : > { %p2086_p3 = por %p2085_p9, %p2084_p6 }
  0x4c   : > { %p2082_p1 = pneg %p2081_p0 }
  0x4d   : > { %p2088_p13 = por %p2087_p11, %p2086_p3 }
  0x4f   : > { %p2089_p5 = pnand %p2088_p13, %p2082_p1 }
  0x51   : > { %2092 = shalt.err (!%p2089_p5)
}
  0x52   : > { %s2093_s12 = scalar_lea.vmem %s215_s20, 256  ;;  %s2239_s18 = smov [#allocation6]  }
  0x53   : > { %p2094_p12 = scmp.ne.s32.totalorder %s215_s20, %s2093_s12  ;;  %s2098_s28 = sshll.u32 %s2239_s18, 4  ;;  %s2099_s28 = int_to_ptr.vmem [resolvable:$false] %s2098_s28 }
  0x54   : > { %s2100_s10 = scalar_lea.vmem %s2099_s28, 512  ;;  %p2101_p7 = scmp.lt.s32.totalorder %s215_s20, %s2099_s28 }
  0x55   : > { %p2096_p10 = pnand %p2094_p12, %p2050_p8  ;;  %p2102_p2 = scmp.lt.s32.totalorder %s2100_s10, %s2093_s12 }
  0x57   : > { %p2097_p0 = pneg %p2096_p10  ;;  %p2103_p6 = por %p2102_p2, %p2101_p7 }
  0x59   : > { %p2104_p9 = pnand %p2103_p6, %p2097_p0 }
  0x5b   : > { %2107 = shalt.err (!%p2104_p9)
}
  0x5c   : > { %1787 = dma.hbm_to_vmem [thread:$0]  (!%p2382_p4), %s2427_s23, 256, %s215_s20, %s203_s30  }
  0x5d   : > { %p3235_p1 = scmp.ne.s32.totalorder %s3234_s6, 0 }
  0x5f   : > { %223 = sbr.rel (%p3235_p1) target bundleno = 1445 (0x5a5), region = 36 }
  0x66   : > { %s225_s7 = sand.u32 1, %s2210_s19   ;;  %p3236_p8 = scmp.ne.s32.totalorder %s3226_s8, 0 }
  0x67   : > { %s1594_s9 = sshll.u32 %s225_s7, 6  ;;  %s226_s5 = scalar_lea.sflag [#allocation4], %s225_s7 }
  0x68   : > { %s229_s0 = scalar_lea.vmem [#allocation3], %s1594_s9 }
  0x69   : > { %2181 = dma.done.wait (%p3236_p8), %s226_s5, 1024  }
  0x6a   : > { %2183 = vsyncadd (%p3236_p8), %s226_s5, 4294966272  ;;  %s1595_s27 = sshll.u32 %s225_s7, 4  ;;  %s235_s26 = scalar_lea.sflag [#allocation7], %s225_s7 }
  0x6b   : > { %s2456_s29 = scalar_lea.vmem [#allocation6], %s1595_s27 }
  0x6c   : > { %2185 = dma.done.wait (%p3236_p8), %s235_s26, 256  }
  0x6d   : > { %2187 = vsyncadd (%p3236_p8), %s235_s26, 4294967040  ;;  %v3218_v0 = vmov 0.0   ;;  %v2241_v1 = vmov 0   ;;  %v273_v2 = vld [vmem:[%s229_s0 + $0x8] sm:$0xff]  ;;  %v275_v3 = vld [vmem:[%s229_s0 + $0x18] sm:$0xff]  ;;  %vm285_vm0 = vcmask 261120  }
  0x6e   : > { %353 = vmatprep.mubr.f32.mxu0 %v3218_v0  ;;  %1887 = vset.pattern.permute.xlu0 %v2241_v1  ;;  %v272_v4 = vld [vmem:[%s229_s0] sm:$0xff]  ;;  %v1762_v5 = vpack.c.bf16 %v275_v3, %v273_v2  ;;  %v274_v6 = vld [vmem:[%s229_s0 + $0x10] sm:$0xff]  ;;  %v277_v7 = vld [vmem:[%s229_s0 + $0x28] sm:$0xff]  ;;  %s1597_s30 = sshll.u32 %s2218_s21, 7  ;;  %vm482_vm1 = vcmask 1043456   ;;  %vm457_vm2 = vcmask 64512  }
  0x6f   : > { %v279_v8 = vld [vmem:[%s229_s0 + $0x38] sm:$0xff]  ;;  %v1764_v9 = vpack.c.bf16 %v274_v6, %v272_v4  ;;  %v276_v11 = vld [vmem:[%s229_s0 + $0x20] sm:$0xff]  ;;  %v278_v12 = vld [vmem:[%s229_s0 + $0x30] sm:$0xff]  ;;  %s2471_s12 = sshra.s32 %s1597_s30, 7  ;;  %vm2242_vm3 = vmmov 0   ;;  %s265_s10 = sand.u32 1, %s2198_s16  }
  0x70   : > { %v1766_v10 = vpack.c.bf16 %v279_v8, %v277_v7  ;;  %1763 = vmatprep.subr.bf16.mxu0 %v1762_v5  ;;  %v271_v13 = vld [vmem:[%s3210_s3] sm:$0xff]  ;;  %v1768_v14 = vpack.c.bf16 %v278_v12, %v276_v11  ;;  %v367_v16 = vld [vmem:[%s2456_s29 + $0x8] sm:$0xff]  ;;  %s1599_s18 = sshll.u32 %s2471_s12, 3  ;;  %s1596_s7 = sshll.u32 %s265_s10, 3 }
  0x71   : > { %1765 = vmatpush1.bf16.msra.mxu0 %v1764_v9  ;;  %282 = vperm.xlu0 %1887, %v271_v13   ;;  %v270_v15 = vld [vmem:[%s3209_s2] sm:$0xff]  ;;  %v369_v17 = vpack.c.bf16 %v367_v16, %v367_v16  ;;  %s413_s28 = scalar_lea.vmem [#allocation2], %s1599_s18  ;;  %s1619_s9 = sshll.u32 %s2222_s22, 1 }
  0x72   : > { %1767 = vmatprep.subr.bf16.mxu0 %v1766_v10  ;;  %v366_v26 = vld [vmem:[%s2456_s29] sm:$0xff]  ;;  %s1453_s5 = scalar_lea.vmem %s2456_s29, %s1599_s18 [#allocation6]  ;;  %s1469_s0 = sadd.s32 %s2218_s21, %s1619_s9 }
  0x73   : > { %402 = vmatprep.mubr.bf16.mxu1 %v369_v17  ;;  %v368_v27 = vpack.c.bf16 %v366_v26, %v366_v26  ;;  %s1620_s27 = sshll.u32 %s1469_s0, 7  ;;  %s267_s26 = scalar_lea.vmem [#allocation8], %s1596_s7 }
  0x74   : > { %s1473_s20 = sshll.u32 %s267_s26, 4  ;;  %s3145_s6 = scalar_lea.hbm %s3211_s4, %s1620_s27  ;;  %s3147_s20 = int_to_ptr.vmem [resolvable:$true] %s1473_s20 }
  0x75   : > { %1769 = vmatpush1.bf16.msra.mxu0 %v1768_v14  ;;  %s1458_s21 = scalar_lea.sflag [#allocation5], %s265_s10  ;;  %s2108_s22 = scalar_lea.vmem %s3147_s20, 128 }
  0x76   : > { %p2109_p7 = scmp.ne.s32.totalorder %s3147_s20, %s2108_s22  ;;  %p3261_p4 = scmp.ne.s32.totalorder %s3227_s11, 0 }
  0x77   : > { %s2243_s29 = smov [#allocation8]  }
  0x78   : > { %1598 = vmatmul.mubr.msk.f32.vlgmr.msra.gmra.mrb[0].mxu0 %vm285_vm0, %v270_v15  ;;  %p2110_p2 = pnand %p2109_p7, %p3261_p4  ;;  %s2112_s30 = sshll.u32 %s2243_s29, 4  ;;  %s2113_s30 = int_to_ptr.vmem [resolvable:$false] %s2112_s30 }
  0x79   : > { %s2114_s12 = scalar_lea.vmem %s2113_s30, 256  ;;  %p2115_p11 = scmp.lt.s32.totalorder %s3147_s20, %s2113_s30 }
  0x7a   : > { %p2111_p3 = pneg %p2110_p2  ;;  %p2116_p13 = scmp.lt.s32.totalorder %s2114_s12, %s2108_s22 }
  0x7c   : > { %p2117_p5 = por %p2116_p13, %p2115_p11 }
  0x7e   : > { %p2118_p12 = pnand %p2117_p5, %p2111_p3 }
  0xf0   : > { %v283_v18 = vpop.permute.xlu0 %282 }
 0x14b   : > { %v355_v19 = vpop.f32.mrb[0].mxu0 }
 0x14c   : > { %v356_v20 = vadd.f32 %v355_v19, %v283_v18  ;;  %v357_v21 = vpop.f32.mrb[1].mxu0 }
 0x14d   : > { %v358_v22 = vadd.f32 %v357_v21, %v283_v18 }
 0x14e   : > { %360 = vst [vmem:[#allocation2] sm:$0xff] %v356_v20  ;;  %v456_v23 = vpack.c.bf16 %v356_v20, %v356_v20 }
 0x14f   : > { %361 = vst [vmem:[#allocation2 + $0x8] sm:$0xff] %v358_v22  ;;  %v2473_v24 = vpack.c.bf16 %v358_v22, %v358_v22 }
 0x150   : > { %1772 = vmatprep.subr.msk.bf16.mxu0 %vm482_vm1, %v456_v23  ;;  %v484_v25 = vsel %vm482_vm1, %v456_v23, 0 }
 0x151   : > { %370 = vmatprep.subr.bf16.mxu1 %v2473_v24  ;;  %1671 = vmatpush3.bf16.msra.mxu0 %v484_v25  ;;  %v900_v35 = vsel %vm482_vm1, %v2473_v24, 0 }
 0x152   : > { %371 = vmatpush1.bf16.xpose.msra.mxu1 %v456_v23  ;;  %1774 = vmatprep.subr.msk.bf16.mxu0 %vm482_vm1, %v2473_v24 }
 0x153   : > { %1773 = vmatprep.subr.msk.bf16.mxu1 %vm482_vm1, %v456_v23 }
 0x156   : > { %v414_v28 = vld [vmem:[%s413_s28] sm:$0xff] }
 0x157   : > { %415 = vxpose.xlu0.b32.start.end [1/1] (short) %v414_v28, 128 }
 0x159   : > { %403 = vmatmul.mubr.bf16.vlgmr.msra.gmra.mrb[0].mxu1 %v368_v27 }
 0x15a   : > { %1771 = vmatpush3.bf16.msra.mxu1 %v484_v25 }
 0x15b   : > { %1688 = vmatprep.subr.bf16.mxu1 %v456_v23 }
 0x1d7   : > { %v431_v29 = vpop.trf.xlu0 }
 0x1db   : > { %v432_v30 = vpop.trf.xlu0 }
 0x1dc   : > { %v447_v31 = vpack.c.bf16 %v432_v30, %v431_v29 }
 0x1de   : > { %1672 = vmatprep.mubr.msk.bf16.mxu0 %vm457_vm2, %v447_v31 }
 0x1df   : > { %v433_v32 = vpop.trf.xlu0 }
 0x1e3   : > { %v434_v33 = vpop.trf.xlu0 }
 0x1e4   : > { %v448_v34 = vpack.c.bf16 %v434_v33, %v433_v32 }
 0x1e6   : > { %1673 = vmatmul.mubr.msk.bf16.vlgmr.msra.gmra.mrb[4].mxu0 %vm457_vm2, %v448_v34 }
 0x1e7   : > { %1707 = vmatpush3.bf16.msra.mxu0 %v900_v35  ;;  %v435_v36 = vpop.trf.xlu0 }
 0x1e8   : > { %1742 = vmatprep.subr.bf16.mxu0 %v3218_v0 }
 0x1eb   : > { %v436_v37 = vpop.trf.xlu0 }
 0x1ec   : > { %v449_v38 = vpack.c.bf16 %v436_v37, %v435_v36 }
 0x1ee   : > { %1676 = vmatprep.mubr.msk.bf16.mxu0 %vm457_vm2, %v449_v38 }
 0x1ef   : > { %v437_v39 = vpop.trf.xlu0 }
 0x1f3   : > { %v438_v40 = vpop.trf.xlu0 }
 0x1f4   : > { %v450_v41 = vpack.c.bf16 %v438_v40, %v437_v39 }
 0x1f6   : > { %1677 = vmatmul.mubr.msk.bf16.gmra.mrb[8].mxu0 %vm457_vm2, %v450_v41 }
 0x1f7   : > { %1708 = vmatprep.mubr.msk.bf16.mxu0 %vm457_vm2, %v447_v31  ;;  %v439_v42 = vpop.trf.xlu0 }
 0x1fb   : > { %v440_v43 = vpop.trf.xlu0 }
 0x1fc   : > { %v451_v44 = vpack.c.bf16 %v440_v43, %v439_v42 }
 0x1fe   : > { %1680 = vmatprep.mubr.msk.bf16.mxu1 %vm457_vm2, %v451_v44  ;;  %1709 = vmatmul.mubr.msk.bf16.vlgmr.msra.gmra.mrb[12].mxu0 %vm457_vm2, %v448_v34 }
 0x1ff   : > { %1712 = vmatprep.mubr.msk.bf16.mxu0 %vm457_vm2, %v449_v38  ;;  %v441_v45 = vpop.trf.xlu0 }
 0x203   : > { %v442_v46 = vpop.trf.xlu0 }
 0x204   : > { %v452_v47 = vpack.c.bf16 %v442_v46, %v441_v45 }
 0x206   : > { %1681 = vmatmul.mubr.msk.bf16.vlgmr.msra.gmra.mrb[4].mxu1 %vm457_vm2, %v452_v47  ;;  %1713 = vmatmul.mubr.msk.bf16.gmra.mrb[16].mxu0 %vm457_vm2, %v450_v41 }
 0x207   : > { %1689 = vmatpush3.bf16.xpose.msra.mxu1 %v456_v23  ;;  %1716 = vmatprep.mubr.msk.bf16.mxu0 %vm457_vm2, %v451_v44  ;;  %v443_v48 = vpop.trf.xlu0 }
 0x208   : > { %1724 = vmatprep.subr.bf16.mxu1 %v2473_v24 }
 0x20b   : > { %v444_v49 = vpop.trf.xlu0 }
 0x20c   : > { %v453_v50 = vpack.c.bf16 %v444_v49, %v443_v48 }
 0x20e   : > { %1717 = vmatmul.mubr.msk.bf16.gmra.mrb[20].mxu0 %vm457_vm2, %v452_v47  ;;  %1684 = vmatprep.mubr.msk.bf16.mxu1 %vm457_vm2, %v453_v50 }
 0x20f   : > { %1720 = vmatprep.mubr.msk.bf16.mxu0 %vm457_vm2, %v453_v50  ;;  %v445_v51 = vpop.trf.xlu0 }
 0x213   : > { %v446_v52 = vpop.trf.xlu0 }
 0x214   : > { %v454_v53 = vpack.c.bf16 %v446_v52, %v445_v51 }
 0x216   : > { %1685 = vmatmul.mubr.msk.bf16.gmra.mrb[8].mxu1 %vm457_vm2, %v454_v53  ;;  %1721 = vmatmul.mubr.msk.bf16.gmra.mrb[24].mxu0 %vm457_vm2, %v454_v53 }
 0x217   : > { %1758 = vmatprep.mubr.msk.bf16.mxu0 %vm2242_vm3, %v3218_v0 }
 0x22c   : > { %v2505_v54 = vpop.f32.mrb[0].mxu1 }
 0x22d   : > { %3237 = vst [vmem:[#allocation17_spill] sm:$0xff] %v2505_v54  ;;  %v406_v55 = vpop.f32.mrb[1].mxu1 }
 0x22e   : > { %v407_v56 = vpop.f32.mrb[2].mxu1 }
 0x22f   : > { %v408_v57 = vpop.f32.mrb[3].mxu1 }
 0x2b9   : > { %v2507_v58 = vpop.f32.mrb[4].mxu0 }
 0x2ba   : > { %587 = vmax.xlane.f32.xlu1 %v2507_v58  ;;  %v2510_v59 = vpop.f32.mrb[5].mxu0 }
 0x2bb   : > { %v2512_v60 = vpop.f32.mrb[6].mxu0 }
 0x2bc   : > { %v2514_v61 = vpop.f32.mrb[7].mxu0 }
 0x2be   : > { %583 = vmax.xlane.f32.xlu1 %v2510_v59 }
 0x2c2   : > { %589 = vmax.xlane.f32.xlu1 %v2512_v60 }
 0x2c6   : > { %585 = vmax.xlane.f32.xlu1 %v2514_v61 }
 0x2c9   : > { %v2519_v62 = vpop.f32.mrb[8].mxu0 }
 0x2ca   : > { %595 = vmax.xlane.f32.xlu1 %v2519_v62  ;;  %v2522_v63 = vpop.f32.mrb[9].mxu0 }
 0x2cb   : > { %v2524_v1 = vpop.f32.mrb[10].mxu0 }
 0x2cc   : > { %v2526_v2 = vpop.f32.mrb[11].mxu0 }
 0x2ce   : > { %591 = vmax.xlane.f32.xlu1 %v2522_v63 }
 0x2d1   : > { %v2529_v3 = vpop.f32.mrb[12].mxu0 }
 0x2d2   : > { %597 = vmax.xlane.f32.xlu1 %v2524_v1  ;;  %v2532_v4 = vpop.f32.mrb[13].mxu0 }
 0x2d3   : > { %v2534_v5 = vpop.f32.mrb[14].mxu0 }
 0x2d4   : > { %v2536_v6 = vpop.f32.mrb[15].mxu0 }
 0x2d6   : > { %593 = vmax.xlane.f32.xlu1 %v2526_v2 }
 0x2d9   : > { %v2539_v7 = vpop.f32.mrb[4].mxu1  ;;  %v2541_v8 = vpop.f32.mrb[16].mxu0 }
 0x2da   : > { %v2543_v9 = vpop.f32.mrb[5].mxu1  ;;  %v2545_v10 = vpop.f32.mrb[17].mxu0 }
 0x2db   : > { %v2547_v11 = vpop.f32.mrb[18].mxu0  ;;  %599 = vmax.xlane.f32.xlu1 %v2543_v9  ;;  %v2550_v12 = vpop.f32.mrb[6].mxu1 }
 0x2dc   : > { %v2552_v13 = vpop.f32.mrb[7].mxu1  ;;  %v2554_v14 = vpop.f32.mrb[19].mxu0 }
 0x2dd   : > { %601 = vmax.xlane.f32.xlu0 %v2552_v13 }
 0x2df   : > { %603 = vmax.xlane.f32.xlu1 %v2539_v7 }
 0x2e1   : > { %v2558_v15 = vpop.f32.mrb[20].mxu0 }
 0x2e2   : > { %v2560_v16 = vpop.f32.mrb[21].mxu0 }
 0x2e3   : > { %v2562_v17 = vpop.f32.mrb[22].mxu0  ;;  %605 = vmax.xlane.f32.xlu1 %v2550_v12 }
 0x2e4   : > { %v2565_v18 = vpop.f32.mrb[23].mxu0 }
 0x2e7   : > { %999 = vmax.xlane.f32.xlu1 %v2532_v4 }
 0x2e9   : > { %v2568_v19 = vpop.f32.mrb[8].mxu1  ;;  %v2570_v20 = vpop.f32.mrb[24].mxu0 }
 0x2ea   : > { %v2572_v21 = vpop.f32.mrb[9].mxu1  ;;  %v2574_v22 = vpop.f32.mrb[25].mxu0 }
 0x2eb   : > { %v2576_v23 = vpop.f32.mrb[26].mxu0  ;;  %1001 = vmax.xlane.f32.xlu1 %v2536_v6  ;;  %v2579_v25 = vpop.f32.mrb[10].mxu1 }
 0x2ec   : > { %v2581_v26 = vpop.f32.mrb[11].mxu1  ;;  %v2583_v27 = vpop.f32.mrb[27].mxu0 }
 0x2ef   : > { %611 = vmax.xlane.f32.xlu1 %v2568_v19 }
 0x2f3   : > { %607 = vmax.xlane.f32.xlu1 %v2572_v21 }
 0x2f7   : > { %613 = vmax.xlane.f32.xlu1 %v2579_v25 }
 0x2fb   : > { %609 = vmax.xlane.f32.xlu1 %v2581_v26 }
 0x2ff   : > { %1003 = vmax.xlane.f32.xlu1 %v2529_v3 }
 0x303   : > { %1005 = vmax.xlane.f32.xlu1 %v2534_v5 }
 0x307   : > { %1007 = vmax.xlane.f32.xlu1 %v2545_v10 }
 0x30b   : > { %1009 = vmax.xlane.f32.xlu1 %v2554_v14 }
 0x30f   : > { %1011 = vmax.xlane.f32.xlu1 %v2541_v8 }
 0x313   : > { %1013 = vmax.xlane.f32.xlu1 %v2547_v11 }
 0x317   : > { %1015 = vmax.xlane.f32.xlu1 %v2560_v16 }
 0x31b   : > { %1017 = vmax.xlane.f32.xlu1 %v2565_v18 }
 0x31f   : > { %1019 = vmax.xlane.f32.xlu1 %v2558_v15 }
 0x323   : > { %1021 = vmax.xlane.f32.xlu1 %v2562_v17 }
 0x327   : > { %1023 = vmax.xlane.f32.xlu1 %v2574_v22 }
 0x32b   : > { %1027 = vmax.xlane.f32.xlu1 %v2570_v20 }
 0x32f   : > { %1025 = vmax.xlane.f32.xlu1 %v2583_v27 }
 0x333   : > { %1029 = vmax.xlane.f32.xlu1 %v2576_v23 }
 0x347   : > { %v2603_v28 = vpop.xlane.xlu1 %587 }
 0x348   : > { %v665_v29 = vsub.f32 %v2507_v58, %v2603_v28 }
 0x34a   : > { %v683_v30 = vmul.f32 1.442695, %v665_v29 }
 0x34b   : > { %v2607_v31 = vpop.xlane.xlu1 %583 }
 0x34c   : > { %1888 = vpow2.f32 %v683_v30  ;;  %v663_v32 = vsub.f32 %v2510_v59, %v2607_v31 }
 0x34e   : > { %v679_v33 = vmul.f32 1.442695, %v663_v32 }
 0x34f   : > { %v2611_v34 = vpop.xlane.xlu1 %589 }
 0x350   : > { %1890 = vpow2.f32 %v679_v33  ;;  %v666_v35 = vsub.f32 %v2512_v60, %v2611_v34 }
 0x352   : > { %v685_v36 = vmul.f32 1.442695, %v666_v35 }
 0x353   : > { %v2615_v37 = vpop.xlane.xlu1 %585 }
 0x354   : > { %1892 = vpow2.f32 %v685_v36  ;;  %v664_v38 = vsub.f32 %v2514_v61, %v2615_v37 }
 0x356   : > { %v1889_v39 = vpop.eup %1888  ;;  %v681_v40 = vmul.f32 1.442695, %v664_v38 }
 0x357   : > { %v2619_v41 = vpop.xlane.xlu1 %595  ;;  %731 = vadd.xlane.f32.xlu0 %v1889_v39 }
 0x358   : > { %1894 = vpow2.f32 %v681_v40  ;;  %v669_v43 = vsub.f32 %v2519_v62, %v2619_v41 }
 0x35a   : > { %v1891_v42 = vpop.eup %1890  ;;  %v691_v46 = vmul.f32 1.442695, %v669_v43 }
 0x35b   : > { %v2623_v44 = vpop.xlane.xlu1 %591  ;;  %727 = vadd.xlane.f32.xlu1 %v1891_v42 }
 0x35c   : > { %v667_v47 = vsub.f32 %v2522_v63, %v2623_v44  ;;  %1896 = vpow2.f32 %v691_v46 }
 0x35e   : > { %v2625_v45 = vpop.eup %1892  ;;  %v687_v53 = vmul.f32 1.442695, %v667_v47 }
 0x35f   : > { %v2629_v48 = vpop.xlane.xlu1 %597  ;;  %v776_v49 = vpack.c.bf16 %v2625_v45, %v1889_v39 }
 0x360   : > { %v670_v50 = vsub.f32 %v2524_v1, %v2629_v48 }
 0x362   : > { %v1895_v51 = vpop.eup %1894  ;;  %v693_v52 = vmul.f32 1.442695, %v670_v50 }
 0x363   : > { %v2634_v55 = vpop.xlane.xlu1 %593  ;;  %729 = vadd.xlane.f32.xlu1 %v1895_v51  ;;  %v775_v56 = vpack.c.bf16 %v1895_v51, %v1891_v42 }
 0x364   : > { %1898 = vpow2.f32 %v693_v52  ;;  %v668_v57 = vsub.f32 %v2526_v2, %v2634_v55 }
 0x365   : > { %1690 = vmatprep.mubr.bf16.mxu1 %v775_v56  ;;  %1900 = vpow2.f32 %v687_v53 }
 0x366   : > { %v689_v58 = vmul.f32 1.442695, %v668_v57  ;;  %1691 = vmatmul.mubr.bf16.vlgmr.msra.gmra.mrb[12].mxu1 %v776_v49  ;;  %v2649_v2 = vpop.eup %1896 }
 0x367   : > { %1725 = vmatpush3.bf16.xpose.msra.mxu1 %v2473_v24 }
 0x368   : > { %1902 = vpow2.f32 %v689_v58  ;;  %v2639_v59 = vpop.xlane.xlu1 %599 }
 0x369   : > { %v671_v60 = vsub.f32 %v2543_v9, %v2639_v59 }
 0x36a   : > { %v2643_v61 = vpop.xlane.xlu0 %601 }
 0x36b   : > { %v695_v62 = vmul.f32 1.442695, %v671_v60  ;;  %v672_v63 = vsub.f32 %v2552_v13, %v2643_v61 }
 0x36c   : > { %v2647_v1 = vpop.xlane.xlu1 %603 }
 0x36d   : > { %v697_v29 = vmul.f32 1.442695, %v672_v63  ;;  %v673_v24 = vsub.f32 %v2539_v7, %v2647_v1  ;;  %1904 = vpow2.f32 %v695_v62 }
 0x36e   : > { %v2653_v30 = vpop.eup %1898 }
 0x36f   : > { %1906 = vpow2.f32 %v697_v29  ;;  %v778_v9 = vpack.c.bf16 %v2653_v30, %v2649_v2  ;;  %v699_v32 = vmul.f32 1.442695, %v673_v24  ;;  %v2659_v35 = vpop.eup %1900 }
 0x370   : > { %v2657_v33 = vpop.xlane.xlu1 %605 }
 0x371   : > { %v674_v13 = vsub.f32 %v2550_v12, %v2657_v33  ;;  %1908 = vpow2.f32 %v699_v32 }
 0x372   : > { %v2663_v36 = vpop.eup %1902 }
 0x373   : > { %v701_v38 = vmul.f32 1.442695, %v674_v13  ;;  %v777_v7 = vpack.c.bf16 %v2663_v36, %v2659_v35 }
 0x374   : > { %v1000_v39 = vpop.xlane.xlu1 %999 }
 0x375   : > { %1910 = vpow2.f32 %v701_v38  ;;  %v2668_v40 = vmax.f32 %v2607_v31, %v1000_v39  ;;  %1694 = vmatprep.mubr.bf16.mxu1 %v777_v7 }
 0x376   : > { %1695 = vmatmul.mubr.bf16.gmra.mrb[16].mxu1 %v778_v9 }
 0x377   : > { %v1047_v42 = vsub.f32 %v2607_v31, %v2668_v40  ;;  %v1095_v12 = vsub.f32 %v2532_v4, %v2668_v40  ;;  %v2674_v43 = vpop.eup %1904 }
 0x378   : > { %v1002_v46 = vpop.xlane.xlu1 %1001 }
 0x379   : > { %v2676_v47 = vpop.eup %1906  ;;  %v1111_v49 = vmul.f32 1.442695, %v1095_v12  ;;  %v2679_v50 = vmax.f32 %v2615_v37, %v1002_v46 }
 0x37a   : > { %v779_v51 = vpack.c.bf16 %v2676_v47, %v2674_v43 }
 0x37b   : > { %v1048_v52 = vsub.f32 %v2615_v37, %v2679_v50  ;;  %v1096_v53 = vsub.f32 %v2536_v6, %v2679_v50  ;;  %1912 = vpow2.f32 %v1111_v49  ;;  %v2689_v57 = vpop.eup %1908  ;;  %v619_v50 = vsub.f32 -inf, %v2623_v44 }
 0x37c   : > { %1698 = vmatprep.mubr.bf16.mxu1 %v779_v51  ;;  %v2687_v4 = vpop.xlane.xlu1 %611 }
 0x37d   : > { %v1113_v56 = vmul.f32 1.442695, %v1096_v53  ;;  %v677_v60 = vsub.f32 %v2568_v19, %v2687_v4 }
 0x37f   : > { %v2691_v58 = vpop.eup %1910  ;;  %1914 = vpow2.f32 %v1113_v56  ;;  %v707_v6 = vmul.f32 1.442695, %v677_v60 }
 0x380   : > { %v2695_v62 = vpop.xlane.xlu1 %607  ;;  %v780_v63 = vpack.c.bf16 %v2691_v58, %v2689_v57 }
 0x381   : > { %v675_v29 = vsub.f32 %v2572_v21, %v2695_v62  ;;  %1916 = vpow2.f32 %v707_v6 }
 0x382   : > { %1699 = vmatmul.mubr.bf16.gmra.mrb[20].mxu1 %v780_v63 }
 0x383   : > { %v703_v19 = vmul.f32 1.442695, %v675_v29 }
 0x384   : > { %v2701_v24 = vpop.xlane.xlu1 %613 }
 0x385   : > { %v678_v9 = vsub.f32 %v2579_v25, %v2701_v24  ;;  %v1913_v32 = vpop.eup %1912 }
 0x386   : > { %1159 = vadd.xlane.f32.xlu1 %v1913_v32 }
 0x387   : > { %v709_v13 = vmul.f32 1.442695, %v678_v9 }
 0x388   : > { %v2705_v38 = vpop.xlane.xlu1 %609 }
 0x389   : > { %1918 = vpow2.f32 %v709_v13  ;;  %v676_v7 = vsub.f32 %v2581_v26, %v2705_v38  ;;  %v1915_v39 = vpop.eup %1914 }
 0x38a   : > { %1161 = vadd.xlane.f32.xlu1 %v1915_v39  ;;  %v1223_v21 = vpack.c.bf16 %v1915_v39, %v1913_v32  ;;  %1920 = vpow2.f32 %v703_v19 }
 0x38b   : > { %v705_v12 = vmul.f32 1.442695, %v676_v7  ;;  %v2718_v26 = vpop.eup %1916 }
 0x38c   : > { %v1004_v46 = vpop.xlane.xlu1 %1003 }
 0x38d   : > { %1922 = vpow2.f32 %v705_v12  ;;  %v2710_v25 = vmax.f32 %v2603_v28, %v1004_v46 }
 0x38e   : > { %733 = vadd.xlane.f32.xlu1 %v2625_v45 }
 0x38f   : > { %v1097_v49 = vsub.f32 %v2529_v3, %v2710_v25 }
 0x390   : > { %v1006_v51 = vpop.xlane.xlu1 %1005 }
 0x391   : > { %v1115_v53 = vmul.f32 1.442695, %v1097_v49  ;;  %v2716_v56 = vmax.f32 %v2611_v34, %v1006_v51 }
 0x393   : > { %v2720_v60 = vpop.eup %1918  ;;  %v1098_v63 = vsub.f32 %v2534_v5, %v2716_v56  ;;  %1924 = vpow2.f32 %v1115_v53 }
 0x394   : > { %v1008_v6 = vpop.xlane.xlu1 %1007  ;;  %v782_v29 = vpack.c.bf16 %v2720_v60, %v2718_v26  ;;  %v2729_v9 = vpop.eup %1920 }
 0x395   : > { %v1117_v3 = vmul.f32 1.442695, %v1098_v63  ;;  %v2727_v45 = vmax.f32 %v2623_v44, %v1008_v6 }
 0x397   : > { %v2731_v32 = vpop.eup %1922  ;;  %v1051_v13 = vsub.f32 %v2623_v44, %v2727_v45  ;;  %v1099_v19 = vsub.f32 %v2545_v10, %v2727_v45  ;;  %1926 = vpow2.f32 %v1117_v3  ;;  %v623_v44 = vsub.f32 -inf, %v2639_v59 }
 0x398   : > { %v1010_v5 = vpop.xlane.xlu1 %1009  ;;  %v781_v7 = vpack.c.bf16 %v2731_v32, %v2729_v9  ;;  %v1050_v45 = vsub.f32 %v2611_v34, %v2716_v56 }
 0x399   : > { %v1119_v39 = vmul.f32 1.442695, %v1099_v19  ;;  %v2740_v12 = vmax.f32 %v2634_v55, %v1010_v5 }
 0x39a   : > { %1702 = vmatprep.mubr.bf16.mxu1 %v781_v7 }
 0x39b   : > { %v1052_v46 = vsub.f32 %v2634_v55, %v2740_v12  ;;  %v1100_v49 = vsub.f32 %v2554_v14, %v2740_v12  ;;  %1703 = vmatmul.mubr.bf16.gmra.mrb[24].mxu1 %v782_v29  ;;  %1928 = vpow2.f32 %v1119_v39  ;;  %v647_v12 = vmul.f32 1.442695, %v623_v44 }
 0x39c   : > { %1726 = vmatprep.mubr.bf16.mxu1 %v1223_v21  ;;  %v1012_v10 = vpop.xlane.xlu1 %1011 }
 0x39d   : > { %v1121_v51 = vmul.f32 1.442695, %v1100_v49  ;;  %v2747_v53 = vmax.f32 %v2619_v41, %v1012_v10  ;;  %v1925_v63 = vpop.eup %1924 }
 0x39e   : > { %1163 = vadd.xlane.f32.xlu0 %v1925_v63 }
 0x39f   : > { %v1101_v6 = vsub.f32 %v2541_v8, %v2747_v53  ;;  %1930 = vpow2.f32 %v1121_v51 }
 0x3a0   : > { %v1014_v3 = vpop.xlane.xlu1 %1013 }
 0x3a1   : > { %v1123_v19 = vmul.f32 1.442695, %v1101_v6  ;;  %v2752_v5 = vmax.f32 %v2629_v48, %v1014_v3  ;;  %v1927_v14 = vpop.eup %1926 }
 0x3a2   : > { %735 = vadd.xlane.f32.xlu0 %v2659_v35  ;;  %1165 = vadd.xlane.f32.xlu1 %v1927_v14  ;;  %v1224_v29 = vpack.c.bf16 %v1927_v14, %v1925_v63 }
 0x3a3   : > { %v1102_v21 = vsub.f32 %v2547_v11, %v2752_v5  ;;  %1932 = vpow2.f32 %v1123_v19 }
 0x3a4   : > { %v1016_v7 = vpop.xlane.xlu1 %1015  ;;  %1727 = vmatmul.mubr.bf16.vlgmr.msra.gmra.mrb[28].mxu1 %v1224_v29 }
 0x3a5   : > { %v1125_v39 = vmul.f32 1.442695, %v1102_v21  ;;  %v2758_v8 = vmax.f32 %v2639_v59, %v1016_v7  ;;  %v1929_v49 = vpop.eup %1928 }
 0x3a6   : > { %737 = vadd.xlane.f32.xlu1 %v2663_v36  ;;  %1167 = vadd.xlane.f32.xlu0 %v1929_v49 }
 0x3a7   : > { %v1055_v10 = vsub.f32 %v2639_v59, %v2758_v8  ;;  %v1103_v51 = vsub.f32 %v2560_v16, %v2758_v8  ;;  %1934 = vpow2.f32 %v1125_v39 }
 0x3a8   : > { %v1018_v11 = vpop.xlane.xlu1 %1017 }
 0x3a9   : > { %v1127_v35 = vmul.f32 1.442695, %v1103_v51  ;;  %v2766_v63 = vmax.f32 %v2643_v61, %v1018_v11  ;;  %v1931_v6 = vpop.eup %1930 }
 0x3aa   : > { %739 = vadd.xlane.f32.xlu0 %v2649_v2  ;;  %1169 = vadd.xlane.f32.xlu1 %v1931_v6  ;;  %v1225_v19 = vpack.c.bf16 %v1931_v6, %v1929_v49 }
 0x3ab   : > { %v1104_v3 = vsub.f32 %v2565_v18, %v2766_v63  ;;  %1936 = vpow2.f32 %v1127_v35 }
 0x3ac   : > { %v1020_v14 = vpop.xlane.xlu1 %1019  ;;  %1730 = vmatprep.mubr.bf16.mxu1 %v1225_v19 }
 0x3ad   : > { %v1129_v16 = vmul.f32 1.442695, %v1104_v3  ;;  %v2772_v36 = vmax.f32 %v2647_v1, %v1020_v14  ;;  %v1933_v21 = vpop.eup %1932 }
 0x3ae   : > { %741 = vadd.xlane.f32.xlu1 %v2653_v30  ;;  %1171 = vadd.xlane.f32.xlu0 %v1933_v21 }
 0x3af   : > { %v1105_v29 = vsub.f32 %v2558_v15, %v2772_v36  ;;  %1938 = vpow2.f32 %v1129_v16 }
 0x3b0   : > { %v1022_v18 = vpop.xlane.xlu1 %1021 }
 0x3b1   : > { %v1131_v7 = vmul.f32 1.442695, %v1105_v29  ;;  %v2778_v2 = vmax.f32 %v2657_v33, %v1022_v18  ;;  %v1935_v39 = vpop.eup %1934 }
 0x3b2   : > { %743 = vadd.xlane.f32.xlu0 %v2674_v43  ;;  %1173 = vadd.xlane.f32.xlu1 %v1935_v39  ;;  %v1226_v51 = vpack.c.bf16 %v1935_v39, %v1933_v21 }
 0x3b3   : > { %v1106_v49 = vsub.f32 %v2562_v17, %v2778_v2  ;;  %1940 = vpow2.f32 %v1131_v7 }
 0x3b4   : > { %v1024_v11 = vpop.xlane.xlu1 %1023  ;;  %1731 = vmatmul.mubr.bf16.gmra.mrb[32].mxu1 %v1226_v51 }
 0x3b5   : > { %v1133_v15 = vmul.f32 1.442695, %v1106_v49  ;;  %v2784_v30 = vmax.f32 %v2695_v62, %v1024_v11  ;;  %v1937_v35 = vpop.eup %1936 }
 0x3b6   : > { %745 = vadd.xlane.f32.xlu1 %v2676_v47  ;;  %1175 = vadd.xlane.f32.xlu0 %v1937_v35 }
 0x3b7   : > { %v1059_v6 = vsub.f32 %v2695_v62, %v2784_v30  ;;  %v1107_v3 = vsub.f32 %v2574_v22, %v2784_v30  ;;  %1942 = vpow2.f32 %v1133_v15 }
 0x3b8   : > { %v1028_v17 = vpop.xlane.xlu1 %1027 }
 0x3b9   : > { %v1135_v43 = vmul.f32 1.442695, %v1107_v3  ;;  %v2792_v19 = vmax.f32 %v2687_v4, %v1028_v17  ;;  %v1939_v14 = vpop.eup %1938 }
 0x3ba   : > { %747 = vadd.xlane.f32.xlu0 %v2689_v57  ;;  %1177 = vadd.xlane.f32.xlu1 %v1939_v14  ;;  %v1227_v22 = vpack.c.bf16 %v1939_v14, %v1937_v35 }
 0x3bb   : > { %v1061_v16 = vsub.f32 %v2687_v4, %v2792_v19  ;;  %v1109_v21 = vsub.f32 %v2570_v20, %v2792_v19  ;;  %1944 = vpow2.f32 %v1135_v43 }
 0x3bc   : > { %v1026_v47 = vpop.xlane.xlu1 %1025  ;;  %1734 = vmatprep.mubr.bf16.mxu1 %v1227_v22 }
 0x3bd   : > { %v2800_v29 = vmax.f32 %v2705_v38, %v1026_v47  ;;  %v1941_v18 = vpop.eup %1940  ;;  %v1139_v7 = vmul.f32 1.442695, %v1109_v21 }
 0x3be   : > { %749 = vadd.xlane.f32.xlu1 %v2691_v58  ;;  %1179 = vadd.xlane.f32.xlu0 %v1941_v18 }
 0x3bf   : > { %v1060_v39 = vsub.f32 %v2705_v38, %v2800_v29  ;;  %v1108_v49 = vsub.f32 %v2583_v27, %v2800_v29  ;;  %1946 = vpow2.f32 %v1139_v7  ;;  %v1065_v7 = vmul.f32 1.442695, %v1048_v52 }
 0x3c0   : > { %v1030_v20 = vpop.xlane.xlu1 %1029  ;;  %v620_v52 = vsub.f32 -inf, %v2634_v55 }
 0x3c1   : > { %v1137_v57 = vmul.f32 1.442695, %v1108_v49  ;;  %v2808_v51 = vmax.f32 %v2701_v24, %v1030_v20  ;;  %v1943_v11 = vpop.eup %1942  ;;  %v1089_v30 = vmul.f32 1.442695, %v1060_v39 }
 0x3c2   : > { %751 = vadd.xlane.f32.xlu0 %v2729_v9  ;;  %1181 = vadd.xlane.f32.xlu1 %v1943_v11  ;;  %v1228_v27 = vpack.c.bf16 %v1943_v11, %v1941_v18  ;;  %v615_v9 = vsub.f32 -inf, %v2607_v31 }
 0x3c3   : > { %v1110_v35 = vsub.f32 %v2576_v23, %v2808_v51  ;;  %1948 = vpow2.f32 %v1137_v57 }
 0x3c4   : > { %1735 = vmatmul.mubr.bf16.gmra.mrb[36].mxu1 %v1228_v27  ;;  %v631_v22 = vmul.f32 1.442695, %v615_v9 }
 0x3c5   : > { %v1141_v58 = vmul.f32 1.442695, %v1110_v35  ;;  %v1945_v3 = vpop.eup %1944 }
 0x3c6   : > { %753 = vadd.xlane.f32.xlu1 %v2731_v32  ;;  %1183 = vadd.xlane.f32.xlu0 %v1945_v3  ;;  %v616_v32 = vsub.f32 -inf, %v2615_v37 }
 0x3c7   : > { %1950 = vpow2.f32 %v1141_v58  ;;  %v639_v58 = vmul.f32 1.442695, %v619_v50  ;;  %v622_v50 = vsub.f32 -inf, %v2629_v48 }
 0x3c8   : > { %1952 = vpow2.f32 %v631_v22  ;;  %v633_v47 = vmul.f32 1.442695, %v616_v32  ;;  %v1073_v22 = vmul.f32 1.442695, %v1052_v46  ;;  %v1069_v46 = vmul.f32 1.442695, %v1050_v45 }
 0x3c9   : > { %v1947_v17 = vpop.eup %1946  ;;  %v645_v8 = vmul.f32 1.442695, %v622_v50 }
 0x3ca   : > { %755 = vadd.xlane.f32.xlu0 %v2718_v26  ;;  %v1063_v26 = vmul.f32 1.442695, %v1047_v42 }
 0x3cc   : > { %1954 = vpow2.f32 %v1063_v26  ;;  %v1049_v26 = vsub.f32 %v2603_v28, %v2710_v25 }
 0x3cd   : > { %v1949_v43 = vpop.eup %1948  ;;  %1956 = vpow2.f32 %v633_v47 }
 0x3ce   : > { %1187 = vadd.xlane.f32.xlu0 %v1947_v17  ;;  %1185 = vadd.xlane.f32.xlu1 %v1949_v43  ;;  %v1229_v14 = vpack.c.bf16 %v1949_v43, %v1945_v3  ;;  %1958 = vpow2.f32 %v1065_v7  ;;  %v617_v43 = vsub.f32 -inf, %v2603_v28  ;;  %v1067_v55 = vmul.f32 1.442695, %v1049_v26 }
 0x3cf   : > { %1960 = vpow2.f32 %v639_v58 }
 0x3d0   : > { %1738 = vmatprep.mubr.bf16.mxu1 %v1229_v14  ;;  %v1071_v14 = vmul.f32 1.442695, %v1051_v13 }
 0x3d1   : > { %v1951_v23 = vpop.eup %1950 }
 0x3d2   : > { %757 = vadd.xlane.f32.xlu1 %v2720_v60  ;;  %v1230_v21 = vpack.c.bf16 %v1951_v23, %v1947_v17  ;;  %v1953_v18 = vpop.eup %1952  ;;  %v641_v17 = vmul.f32 1.442695, %v620_v52  ;;  %v1079_v52 = vmul.f32 1.442695, %v1055_v10  ;;  %v1053_v10 = vsub.f32 %v2619_v41, %v2747_v53 }
 0x3d3   : > { %v2826_v60 = vmul.f32 0.0, %v1953_v18 }
 0x3d4   : > { %1739 = vmatmul.mubr.bf16.gmra.mrb[40].mxu1 %v1230_v21  ;;  %1962 = vpow2.f32 %v641_v17  ;;  %v635_v21 = vmul.f32 1.442695, %v617_v43 }
 0x3d5   : > { %1964 = vpow2.f32 %v1071_v14 }
 0x3d6   : > { %1189 = vadd.xlane.f32.xlu1 %v1951_v23  ;;  %v2829_v57 = vpop.eup %1954  ;;  %v618_v23 = vsub.f32 -inf, %v2611_v34  ;;  %1966 = vpow2.f32 %v635_v21 }
 0x3d7   : > { %v1957_v31 = vpop.eup %1956  ;;  %1968 = vpow2.f32 %v1073_v22 }
 0x3d8   : > { %v2834_v40 = vmul.f32 0.0, %v1957_v31  ;;  %v2837_v27 = vpop.eup %1958  ;;  %v637_v47 = vmul.f32 1.442695, %v618_v23  ;;  %v621_v31 = vsub.f32 -inf, %v2619_v41 }
 0x3d9   : > { %v1961_v13 = vpop.eup %1960 }
 0x3da   : > { %1970 = vpow2.f32 %v637_v47  ;;  %v643_v22 = vmul.f32 1.442695, %v621_v31 }
 0x3db   : > { %1972 = vpow2.f32 %v1067_v55 }
 0x3dc   : > { %1974 = vpow2.f32 %v647_v12 }
 0x3dd   : > { %1976 = vpow2.f32 %v1069_v46 }
 0x3de   : > { %v1963_v28 = vpop.eup %1962  ;;  %1978 = vpow2.f32 %v1079_v52 }
 0x3df   : > { %v2872_v56 = vpop.eup %1964  ;;  %1980 = vpow2.f32 %v643_v22 }
 0x3e0   : > { %v1967_v43 = vpop.eup %1966  ;;  %1982 = vpow2.f32 %v645_v8 }
 0x3e1   : > { %v2887_v23 = vpop.eup %1968  ;;  %v2892_v47 = vmul.f32 0.0, %v1967_v43 }
 0x3e4   : > { %v2856_v32 = vpop.xlane.xlu0 %731  ;;  %v1971_v21 = vpop.eup %1970 }
 0x3e5   : > { %v2901_v55 = vmul.f32 0.0, %v1971_v21  ;;  %v628_v21 = vsub.f32 -inf, %v2705_v38 }
 0x3e8   : > { %v728_v49 = vpop.xlane.xlu1 %727 }
 0x3e9   : > { %v759_v20 = vadd.f32 %v728_v49, %v2826_v60  ;;  %v2867_v49 = vmul.f32 0.0, %v1961_v13  ;;  %v627_v13 = vsub.f32 -inf, %v2695_v62  ;;  %v1058_v62 = vsub.f32 %v2657_v33, %v2778_v2 }
 0x3eb   : > { %v2832_v11 = vmul.f32 %v2829_v57, %v759_v20  ;;  %v655_v8 = vmul.f32 1.442695, %v627_v13  ;;  %v1085_v29 = vmul.f32 1.442695, %v1058_v62 }
 0x3f0   : > { %v730_v42 = vpop.xlane.xlu1 %729 }
 0x3f1   : > { %v760_v35 = vadd.f32 %v730_v42, %v2834_v40 }
 0x3f3   : > { %v2840_v37 = vmul.f32 %v2837_v27, %v760_v35  ;;  %v2878_v35 = vmul.f32 0.0, %v1963_v28  ;;  %v2904_v28 = vpop.eup %1972 }
 0x3f4   : > { %v1975_v50 = vpop.eup %1974 }
 0x3f5   : > { %v2918_v43 = vpop.eup %1976 }
 0x413   : > { %v2844_v3 = vpop.xlane.xlu1 %1159 }
 0x417   : > { %v2851_v9 = vpop.xlane.xlu1 %1161 }
 0x41b   : > { %v2863_v18 = vpop.xlane.xlu1 %733 }
 0x42b   : > { %v2865_v7 = vpop.xlane.xlu0 %1163 }
 0x42f   : > { %v736_v25 = vpop.xlane.xlu0 %735  ;;  %v2869_v20 = vpop.xlane.xlu1 %1165 }
 0x430   : > { %v763_v34 = vadd.f32 %v736_v25, %v2867_v49  ;;  %v1054_v25 = vsub.f32 %v2629_v48, %v2752_v5  ;;  %v624_v48 = vsub.f32 -inf, %v2643_v61  ;;  %v1075_v5 = vmul.f32 1.442695, %v1053_v10 }
 0x432   : > { %v2876_v42 = vmul.f32 %v2872_v56, %v763_v34  ;;  %1984 = vpow2.f32 %v1075_v5  ;;  %v649_v13 = vmul.f32 1.442695, %v624_v48  ;;  %v1057_v48 = vsub.f32 %v2647_v1, %v2772_v36 }
 0x433   : > { %v2884_v58 = vpop.xlane.xlu0 %1167  ;;  %v738_v17 = vpop.xlane.xlu1 %737  ;;  %1986 = vpow2.f32 %v655_v8 }
 0x434   : > { %v764_v14 = vadd.f32 %v738_v17, %v2878_v35 }
 0x436   : > { %v2890_v26 = vmul.f32 %v2887_v23, %v764_v14 }
 0x437   : > { %v2894_v44 = vpop.xlane.xlu0 %739  ;;  %v2896_v59 = vpop.xlane.xlu1 %1169 }
 0x439   : > { %v1692_v45 = vpop.f32.mrb[12].mxu1 }
 0x43a   : > { %v882_v12 = vadd.f32 %v1692_v45, %v2892_v47  ;;  %v817_v46 = vpop.f32.mrb[13].mxu1 }
 0x43b   : > { %v880_v34 = vadd.f32 %v817_v46, %v2826_v60  ;;  %v1693_v31 = vpop.f32.mrb[14].mxu1  ;;  %v2909_v52 = vpop.xlane.xlu0 %1171  ;;  %v1077_v46 = vmul.f32 1.442695, %v1054_v25  ;;  %v657_v25 = vmul.f32 1.442695, %v628_v21 }
 0x43c   : > { %v2911_v41 = vpop.xlane.xlu1 %741  ;;  %v883_v53 = vadd.f32 %v1693_v31, %v2901_v55  ;;  %v2915_v17 = vmul.f32 %v2904_v28, %v882_v12  ;;  %v820_v60 = vpop.f32.mrb[15].mxu1  ;;  %v625_v12 = vsub.f32 -inf, %v2647_v1  ;;  %v2930_v31 = vmul.f32 0.0, %v1975_v50 }
 0x43d   : > { %v2922_v14 = vmul.f32 %v2829_v57, %v880_v34  ;;  %v881_v22 = vadd.f32 %v820_v60, %v2834_v40  ;;  %v626_v57 = vsub.f32 -inf, %v2657_v33  ;;  %v2939_v34 = vpop.eup %1978  ;;  %1988 = vpow2.f32 %v1077_v46 }
 0x43e   : > { %v2927_v45 = vmul.f32 %v2918_v43, %v883_v53  ;;  %v629_v53 = vsub.f32 -inf, %v2687_v4  ;;  %v651_v60 = vmul.f32 1.442695, %v625_v12  ;;  %1990 = vpow2.f32 %v649_v13 }
 0x43f   : > { %v744_v0 = vpop.xlane.xlu0 %743  ;;  %v2935_v10 = vmul.f32 %v2837_v27, %v881_v22  ;;  %v1087_v27 = vmul.f32 1.442695, %v1059_v6  ;;  %v653_v8 = vmul.f32 1.442695, %v626_v57  ;;  %v1056_v46 = vsub.f32 %v2643_v61, %v2766_v63 }
 0x440   : > { %v2932_v15 = vpop.xlane.xlu1 %1173  ;;  %v767_v40 = vadd.f32 %v744_v0, %v2930_v31  ;;  %v1981_v0 = vpop.eup %1980  ;;  %1992 = vpow2.f32 %v657_v25  ;;  %v659_v12 = vmul.f32 1.442695, %v629_v53  ;;  %v1083_v57 = vmul.f32 1.442695, %v1057_v48 }
 0x441   : > { %v1983_v21 = vpop.eup %1982  ;;  %1994 = vpow2.f32 %v651_v60  ;;  %v2961_v6 = vmul.f32 0.0, %v1981_v0  ;;  %v630_v63 = vsub.f32 -inf, %v2701_v24  ;;  %v1081_v33 = vmul.f32 1.442695, %v1056_v46 }
 0x442   : > { %v2943_v50 = vmul.f32 %v2939_v34, %v767_v40  ;;  %1996 = vpow2.f32 %v1087_v27  ;;  %v2967_v40 = vmul.f32 0.0, %v1983_v21  ;;  %v2971_v38 = vpop.eup %1984  ;;  %v1091_v60 = vmul.f32 1.442695, %v1061_v16 }
 0x443   : > { %v2948_v22 = vpop.xlane.xlu0 %1175  ;;  %1998 = vpow2.f32 %v653_v8  ;;  %v1987_v25 = vpop.eup %1986  ;;  %v661_v19 = vmul.f32 1.442695, %v630_v63 }
 0x444   : > { %3238 = vst [vmem:[#allocation18_spill] sm:$0xff] %v2943_v50  ;;  %3239 = vst [vmem:[#allocation19_spill] sm:$0xff] %v2948_v22  ;;  %v2950_v5 = vpop.xlane.xlu1 %745  ;;  %2000 = vpow2.f32 %v659_v12  ;;  %v2994_v62 = vmul.f32 0.0, %v1987_v25 }
 0x445   : > { %2002 = vpow2.f32 %v1089_v30 }
 0x446   : > { %2004 = vpow2.f32 %v1083_v57 }
 0x447   : > { %v2963_v1 = vpop.xlane.xlu0 %747  ;;  %v2985_v21 = vpop.eup %1988  ;;  %2006 = vpow2.f32 %v1081_v33 }
 0x448   : > { %v2965_v36 = vpop.xlane.xlu1 %1177  ;;  %v1991_v12 = vpop.eup %1990  ;;  %2008 = vpow2.f32 %v1085_v29 }
 0x449   : > { %3240 = vst [vmem:[#allocation20_spill] sm:$0xff] %v2965_v36  ;;  %v1696_v61 = vpop.f32.mrb[16].mxu1  ;;  %2010 = vpow2.f32 %v1091_v60 }
 0x44a   : > { %v886_v2 = vadd.f32 %v1696_v61, %v2961_v6  ;;  %v833_v13 = vpop.f32.mrb[17].mxu1  ;;  %v1993_v30 = vpop.eup %1992  ;;  %2012 = vpow2.f32 %v661_v19 }
 0x44b   : > { %v884_v39 = vadd.f32 %v833_v13, %v2867_v49  ;;  %v1697_v53 = vpop.f32.mrb[18].mxu1  ;;  %v2977_v27 = vpop.xlane.xlu0 %1179  ;;  %v724_v29 = vmul.f32 0.0, %v1993_v30  ;;  %v3019_v30 = vmul.f32 0.0, %v1991_v12 }
 0x44c   : > { %v2979_v0 = vpop.xlane.xlu1 %749  ;;  %v887_v48 = vadd.f32 %v1697_v53, %v2967_v40  ;;  %v2983_v8 = vmul.f32 %v2971_v38, %v886_v2  ;;  %v836_v49 = vpop.f32.mrb[19].mxu1  ;;  %v3243_v53 = vsub.f32 %v2701_v24, %v2808_v51 }
 0x44d   : > { %v2988_v46 = vmul.f32 %v2872_v56, %v884_v39  ;;  %v885_v4 = vadd.f32 %v836_v49, %v2878_v35  ;;  %v1995_v56 = vpop.eup %1994 }
 0x44e   : > { %v2992_v16 = vmul.f32 %v2985_v21, %v887_v48  ;;  %v3002_v35 = vpop.eup %1996  ;;  %v1093_v25 = vmul.f32 1.442695, %v3243_v53  ;;  %v3010_v60 = vmul.f32 0.0, %v1995_v56 }
 0x44f   : > { %v752_v61 = vpop.xlane.xlu0 %751  ;;  %v2999_v57 = vmul.f32 %v2887_v23, %v885_v4  ;;  %v1999_v63 = vpop.eup %1998 }
 0x450   : > { %v2996_v2 = vpop.xlane.xlu1 %1181  ;;  %v771_v33 = vadd.f32 %v752_v61, %v2994_v62  ;;  %v2001_v39 = vpop.eup %2000  ;;  %v3014_v54 = vmul.f32 0.0, %v1999_v63  ;;  %2014 = vpow2.f32 %v1093_v25 }
 0x451   : > { %3241 = vst [vmem:[#allocation21_spill] sm:$0xff] %v2996_v2  ;;  %v2003_v61 = vpop.eup %2002  ;;  %v725_v51 = vmul.f32 0.0, %v2001_v39 }
 0x452   : > { %v3005_v13 = vmul.f32 %v3002_v35, %v771_v33 }
 0x453   : > { %v3012_v23 = vpop.xlane.xlu0 %1183 }
 0x454   : > { %3242 = vst [vmem:[#allocation22_spill] sm:$0xff] %v3005_v13  ;;  %3244 = vst [vmem:[#allocation23_spill] sm:$0xff] %v3012_v23  ;;  %v754_v48 = vpop.xlane.xlu1 %753  ;;  %v3017_v13 = vpop.eup %2004 }
 0x455   : > { %v772_v49 = vadd.f32 %v754_v48, %v724_v29  ;;  %v1700_v4 = vpop.f32.mrb[20].mxu1  ;;  %v3024_v23 = vpop.eup %2006 }
 0x456   : > { %v890_v19 = vadd.f32 %v1700_v4, %v3010_v60  ;;  %v849_v33 = vpop.f32.mrb[21].mxu1  ;;  %v3030_v2 = vpop.eup %2008 }
 0x457   : > { %v888_v24 = vadd.f32 %v849_v33, %v2930_v31  ;;  %v1701_v56 = vpop.f32.mrb[22].mxu1  ;;  %v3022_v53 = vmul.f32 %v2003_v61, %v772_v49  ;;  %v756_v48 = vpop.xlane.xlu0 %755 }
 0x458   : > { %v891_v63 = vadd.f32 %v1701_v56, %v3014_v54  ;;  %v852_v36 = vpop.f32.mrb[23].mxu1  ;;  %v3028_v4 = vmul.f32 %v3017_v13, %v890_v19  ;;  %v773_v12 = vadd.f32 %v756_v48, %v725_v51  ;;  %v2011_v39 = vpop.eup %2010 }
 0x459   : > { %3245 = vst [vmem:[#allocation24_spill] sm:$0xff] %v3022_v53  ;;  %v889_v22 = vadd.f32 %v852_v36, %v3019_v30  ;;  %v3034_v31 = vmul.f32 %v2939_v34, %v888_v24  ;;  %v2013_v56 = vpop.eup %2012  ;;  %v761_v34 = vadd.f32 %v2856_v32, %v2892_v47  ;;  %v762_v24 = vadd.f32 %v2863_v18, %v2901_v55 }
 0x45a   : > { %3246 = vst [vmem:[#allocation25_spill] sm:$0xff] %v3028_v4  ;;  %v3037_v49 = vmul.f32 %v3030_v2, %v891_v63  ;;  %v3039_v25 = vmul.f32 %v2011_v39, %v773_v12  ;;  %v726_v53 = vmul.f32 0.0, %v2013_v56  ;;  %v2015_v50 = vpop.eup %2014  ;;  %v1191_v56 = vadd.f32 %v2844_v3, %v2832_v11 }
 0x45b   : > { %v3042_v33 = vmul.f32 %v3024_v23, %v889_v22  ;;  %v3044_v19 = vpop.xlane.xlu1 %1185  ;;  %v1145_v63 = vmul.f32 %v2904_v28, %v761_v34  ;;  %v1146_v12 = vmul.f32 %v2918_v43, %v762_v24 }
 0x45c   : > { %3247 = vst [vmem:[#allocation26_spill] sm:$0xff] %v3044_v19 }
 0x45d   : > { %v1193_v22 = vadd.f32 %v2865_v7, %v1145_v63 }
 0x45f   : > { %v758_v4 = vpop.xlane.xlu1 %757  ;;  %2016 = vrcp.f32 %v1193_v22  ;;  %v1196_v22 = vadd.f32 %v2896_v59, %v2890_v26 }
 0x460   : > { %v774_v48 = vadd.f32 %v758_v4, %v726_v53  ;;  %v1194_v4 = vadd.f32 %v2869_v20, %v1146_v12  ;;  %2018 = vrcp.f32 %v1191_v56  ;;  %v766_v20 = vadd.f32 %v2911_v41, %v2967_v40 }
 0x462   : > { %v3046_v36 = vmul.f32 %v2015_v50, %v774_v48  ;;  %v1192_v48 = vadd.f32 %v2851_v9, %v2840_v37  ;;  %2020 = vrcp.f32 %v1194_v4  ;;  %v765_v37 = vadd.f32 %v2894_v44, %v2961_v6 }
 0x464   : > { %3248 = vst [vmem:[#allocation27_spill] sm:$0xff] %v3046_v36  ;;  %2022 = vrcp.f32 %v1192_v48 }
 0x46e   : > { %v1704_v19 = vpop.f32.mrb[24].mxu1 }
 0x46f   : > { %v894_v36 = vadd.f32 %v1704_v19, %v725_v51  ;;  %v865_v32 = vpop.f32.mrb[25].mxu1 }
 0x470   : > { %v892_v18 = vadd.f32 %v865_v32, %v2994_v62  ;;  %v1705_v47 = vpop.f32.mrb[26].mxu1  ;;  %v1149_v62 = vmul.f32 %v2971_v38, %v765_v37 }
 0x471   : > { %v895_v55 = vadd.f32 %v1705_v47, %v726_v53  ;;  %v868_v7 = vpop.f32.mrb[27].mxu1  ;;  %v3061_v28 = vmul.f32 %v2011_v39, %v894_v36  ;;  %v2017_v39 = vpop.eup %2016 }
 0x472   : > { %v893_v43 = vadd.f32 %v868_v7, %v724_v29  ;;  %v3064_v11 = vmul.f32 %v3002_v35, %v892_v18  ;;  %v1150_v35 = vmul.f32 %v2985_v21, %v766_v20  ;;  %v2019_v36 = vpop.eup %2018  ;;  %v1197_v41 = vadd.f32 %v2909_v52, %v1149_v62  ;;  %v3252_v62 = vld [vmem:[#allocation21_spill] sm:$0xff] }
 0x473   : > { %v3066_v3 = vmul.f32 %v2015_v50, %v895_v55 }
 0x474   : > { %v3070_v9 = vmul.f32 %v2003_v61, %v893_v43  ;;  %v2021_v61 = vpop.eup %2020  ;;  %v1198_v21 = vadd.f32 %v2932_v15, %v1150_v35  ;;  %2024 = vrcp.f32 %v1197_v41  ;;  %v770_v15 = vadd.f32 %v2979_v0, %v3014_v54  ;;  %v3251_v43 = vld [vmem:[#allocation19_spill] sm:$0xff]  ;;  %v1188_v35 = vpop.xlane.xlu0 %1187 }
 0x475   : > { %v2023_v24 = vpop.eup %2022 }
 0x476   : > { %v1154_v32 = vmul.f32 %v3030_v2, %v770_v15  ;;  %v3250_v2 = vld [vmem:[#allocation18_spill] sm:$0xff]  ;;  %v3257_v15 = vld [vmem:[#allocation27_spill] sm:$0xff] }
 0x477   : > { %v1728_v51 = vpop.f32.mrb[28].mxu1  ;;  %v1199_v37 = vadd.f32 %v3251_v43, %v3250_v2 }
 0x478   : > { %v1330_v53 = vadd.f32 %v1728_v51, %v2915_v17  ;;  %v1265_v29 = vpop.f32.mrb[29].mxu1  ;;  %v1195_v17 = vadd.f32 %v2884_v58, %v2876_v42  ;;  %v3249_v42 = vmov 0.0   ;;  %v768_v58 = vadd.f32 %v2950_v5, %v3019_v30 }
 0x479   : > { %v1328_v50 = vadd.f32 %v1265_v29, %v2922_v14  ;;  %v1729_v19 = vpop.f32.mrb[30].mxu1 }
 0x47a   : > { %v1362_v34 = vmul.f32 %v2017_v39, %v1330_v53  ;;  %v1331_v44 = vadd.f32 %v1729_v19, %v2927_v45  ;;  %v1268_v6 = vpop.f32.mrb[31].mxu1  ;;  %2026 = vrcp.f32 %v1195_v17  ;;  %v1152_v54 = vmul.f32 %v3024_v23, %v768_v58  ;;  %v3253_v53 = vld [vmem:[#allocation20_spill] sm:$0xff] }
 0x47b   : > { %v1360_v40 = vmul.f32 %v2019_v36, %v1328_v50  ;;  %v1329_v38 = vadd.f32 %v1268_v6, %v2935_v10  ;;  %2028 = vrcp.f32 %v1198_v21  ;;  %v769_v10 = vadd.f32 %v2963_v1, %v3010_v60  ;;  %v3254_v50 = vld [vmem:[#allocation25_spill] sm:$0xff] }
 0x47c   : > { %v1363_v63 = vmul.f32 %v2021_v61, %v1331_v44  ;;  %2030 = vrcp.f32 %v1196_v22  ;;  %v1202_v23 = vadd.f32 %v3252_v62, %v1154_v32  ;;  %v1205_v21 = vadd.f32 %v1188_v35, %v3039_v25  ;;  %v1454_v62 = vld [vmem:[%s1453_s5] sm:$0xff] }
 0x47d   : > { %v1361_v14 = vmul.f32 %v2023_v24, %v1329_v38  ;;  %v1153_v26 = vmul.f32 %v3017_v13, %v769_v10 }
 0x47e   : > { %v1378_v12 = vpack.c.bf16 %v1363_v63, %v1362_v34  ;;  %v2025_v48 = vpop.eup %2024 }
 0x47f   : > { %v1377_v45 = vpack.c.bf16 %v1361_v14, %v1360_v40  ;;  %v1190_v40 = vpop.xlane.xlu1 %1189 }
 0x480   : > { %v1392_v60 = vsel %vm457_vm2, %v1378_v12, 0  ;;  %v1206_v58 = vadd.f32 %v1190_v40, %v3257_v15 }
 0x481   : > { %v1389_v52 = vsel %vm457_vm2, %v1377_v45, 0  ;;  %v3256_v45 = vld [vmem:[#allocation23_spill] sm:$0xff] }
 0x482   : > { %1743 = vmatpush3.bf16.xpose.msra.mxu0 %v1389_v52 }
 0x483   : > { %1744 = vmatprep.subr.bf16.mxu0 %v3249_v42 }
 0x484   : > { %v2027_v47 = vpop.eup %2026 }
 0x485   : > { %v2029_v13 = vpop.eup %2028 }
 0x487   : > { %v1732_v59 = vpop.f32.mrb[32].mxu1 }
 0x488   : > { %v1334_v56 = vadd.f32 %v1732_v59, %v2983_v8  ;;  %v1281_v4 = vpop.f32.mrb[33].mxu1  ;;  %v1201_v8 = vadd.f32 %v2977_v27, %v1153_v26  ;;  %v3258_v59 = vld [vmem:[#allocation24_spill] sm:$0xff] }
 0x489   : > { %v1332_v18 = vadd.f32 %v1281_v4, %v2988_v46  ;;  %v1733_v1 = vpop.f32.mrb[34].mxu1  ;;  %v2031_v46 = vpop.eup %2030 }
 0x48a   : > { %v1366_v0 = vmul.f32 %v2025_v48, %v1334_v56  ;;  %v1335_v5 = vadd.f32 %v1733_v1, %v2992_v16  ;;  %v1284_v30 = vpop.f32.mrb[35].mxu1  ;;  %1745 = vmatpush3.bf16.xpose.msra.mxu0 %v1392_v60  ;;  %v1200_v16 = vadd.f32 %v3253_v53, %v1152_v54  ;;  %2032 = vrcp.f32 %v1201_v8 }
 0x48b   : > { %v1364_v55 = vmul.f32 %v2027_v47, %v1332_v18  ;;  %v1333_v7 = vadd.f32 %v1284_v30, %v2999_v57  ;;  %1746 = vmatprep.subr.bf16.mxu0 %v3249_v42  ;;  %2034 = vrcp.f32 %v1199_v37 }
 0x48c   : > { %v1367_v20 = vmul.f32 %v2029_v13, %v1335_v5  ;;  %2036 = vrcp.f32 %v1202_v23 }
 0x48d   : > { %v1365_v51 = vmul.f32 %v2031_v46, %v1333_v7  ;;  %2038 = vrcp.f32 %v1200_v16 }
 0x48e   : > { %v1380_v29 = vpack.c.bf16 %v1367_v20, %v1366_v0  ;;  %2040 = vrcp.f32 %v1205_v21 }
 0x48f   : > { %v1379_v39 = vpack.c.bf16 %v1365_v51, %v1364_v55 }
 0x490   : > { %v1398_v61 = vsel %vm457_vm2, %v1380_v29, 0 }
 0x491   : > { %v1395_v27 = vsel %vm457_vm2, %v1379_v39, 0 }
 0x492   : > { %1747 = vmatpush3.bf16.xpose.msra.mxu0 %v1395_v27 }
 0x493   : > { %1748 = vmatprep.subr.bf16.mxu0 %v3249_v42 }
 0x494   : > { %v2033_v34 = vpop.eup %2032 }
 0x495   : > { %v2035_v41 = vpop.eup %2034 }
 0x496   : > { %v2037_v63 = vpop.eup %2036 }
 0x497   : > { %v1736_v57 = vpop.f32.mrb[36].mxu1  ;;  %v2039_v12 = vpop.eup %2038 }
 0x498   : > { %v1338_v19 = vadd.f32 %v1736_v57, %v3254_v50  ;;  %v1297_v36 = vpop.f32.mrb[37].mxu1  ;;  %v2041_v1 = vpop.eup %2040 }
 0x499   : > { %v1336_v44 = vadd.f32 %v1297_v36, %v3034_v31  ;;  %v1737_v6 = vpop.f32.mrb[38].mxu1  ;;  %v3255_v31 = vld [vmem:[#allocation22_spill] sm:$0xff] }
 0x49a   : > { %v1370_v38 = vmul.f32 %v2033_v34, %v1338_v19  ;;  %v1339_v24 = vadd.f32 %v1737_v6, %v3037_v49  ;;  %v1300_v17 = vpop.f32.mrb[39].mxu1  ;;  %1749 = vmatpush3.bf16.xpose.msra.mxu0 %v1398_v61  ;;  %v1203_v52 = vadd.f32 %v3256_v45, %v3255_v31  ;;  %v3259_v49 = vld [vmem:[#allocation26_spill] sm:$0xff] }
 0x49b   : > { %v1368_v14 = vmul.f32 %v2035_v41, %v1336_v44  ;;  %v1337_v22 = vadd.f32 %v1300_v17, %v3042_v33  ;;  %1750 = vmatprep.subr.bf16.mxu0 %v3249_v42  ;;  %v1204_v56 = vadd.f32 %v3259_v49, %v3258_v59 }
 0x49c   : > { %v1371_v10 = vmul.f32 %v2037_v63, %v1339_v24  ;;  %2042 = vrcp.f32 %v1203_v52 }
 0x49d   : > { %v1369_v26 = vmul.f32 %v2039_v12, %v1337_v22  ;;  %2044 = vrcp.f32 %v1206_v58 }
 0x49e   : > { %v1382_v4 = vpack.c.bf16 %v1371_v10, %v1370_v38  ;;  %2046 = vrcp.f32 %v1204_v56 }
 0x49f   : > { %v1381_v48 = vpack.c.bf16 %v1369_v26, %v1368_v14 }
 0x4a0   : > { %v1404_v54 = vsel %vm457_vm2, %v1382_v4, 0 }
 0x4a1   : > { %v1401_v25 = vsel %vm457_vm2, %v1381_v48, 0 }
 0x4a2   : > { %1751 = vmatpush3.bf16.xpose.msra.mxu0 %v1401_v25 }
 0x4a3   : > { %1752 = vmatprep.subr.bf16.mxu0 %v3249_v42 }
 0x4a6   : > { %v2043_v0 = vpop.eup %2042 }
 0x4a7   : > { %v1740_v33 = vpop.f32.mrb[40].mxu1  ;;  %v2045_v8 = vpop.eup %2044 }
 0x4a8   : > { %v1342_v32 = vadd.f32 %v1740_v33, %v3061_v28  ;;  %v1313_v18 = vpop.f32.mrb[41].mxu1  ;;  %v2047_v28 = vpop.eup %2046 }
 0x4a9   : > { %v1340_v60 = vadd.f32 %v1313_v18, %v3064_v11  ;;  %v1741_v47 = vpop.f32.mrb[42].mxu1 }
 0x4aa   : > { %v1374_v5 = vmul.f32 %v2041_v1, %v1342_v32  ;;  %v1343_v30 = vadd.f32 %v1741_v47, %v3066_v3  ;;  %v1316_v13 = vpop.f32.mrb[43].mxu1  ;;  %1753 = vmatpush3.bf16.xpose.msra.mxu0 %v1404_v54 }
 0x4ab   : > { %v1372_v55 = vmul.f32 %v2043_v0, %v1340_v60  ;;  %v1341_v7 = vadd.f32 %v1316_v13, %v3070_v9  ;;  %1754 = vmatprep.subr.bf16.mxu0 %v3249_v42  ;;  %v3260_v9 = vld [vmem:[#allocation17_spill] sm:$0xff] }
 0x4ac   : > { %v1375_v11 = vmul.f32 %v2045_v8, %v1343_v30  ;;  %v1376_v20 = vpack.c.bf16 %v3260_v9, %v3260_v9 }
 0x4ad   : > { %v1373_v46 = vmul.f32 %v2047_v28, %v1341_v7 }
 0x4ae   : > { %v1384_v2 = vpack.c.bf16 %v1375_v11, %v1374_v5 }
 0x4af   : > { %v1383_v43 = vpack.c.bf16 %v1373_v46, %v1372_v55 }
 0x4b0   : > { %v1410_v37 = vsel %vm457_vm2, %v1384_v2, 0 }
 0x4b1   : > { %v1407_v3 = vsel %vm457_vm2, %v1383_v43, 0 }
 0x4b2   : > { %1755 = vmatpush3.bf16.xpose.msra.mxu0 %v1407_v3 }
 0x4b3   : > { %1756 = vmatprep.subr.bf16.mxu0 %v3249_v42 }
 0x4ba   : > { %1757 = vmatpush3.bf16.xpose.msra.mxu0 %v1410_v37 }
 0x4c1   : > { %1759 = vmatmul.mubr.msk.bf16.vlgmr.msra.gmra.mrb[28].mxu0 %vm457_vm2, %v1376_v20 }
 0x594   : > { %v1446_v42 = vpop.f32.mrb[28].mxu0 }
 0x595   : > { %v1455_v23 = vadd.f32 %v1454_v62, %v1446_v42  ;;  %v1760_v51 = vpop.f32.mrb[29].mxu0 }
 0x596   : > { %v1449_v53 = vpop.f32.mrb[30].mxu0 }
 0x597   : > { %1456 = vst [vmem:[%s267_s26] sm:$0xff] %v1455_v23  ;;  %v1761_v16 = vpop.f32.mrb[31].mxu0 }
 0x598   : > { %2121 = shalt.err (!%p2118_p12)
}
 0x599   : > { %s2122_s18 = scalar_lea.hbm %s3145_s6, 128  ;;  %s2126_s7 = scalar_lea.hbm %s3211_s4, 512 }
 0x59a   : > { %p2123_p10 = scmp.ne.s32.totalorder %s3145_s6, %s2122_s18  ;;  %p2127_p9 = scmp.lt.u32.totalorder %s3145_s6, %s3211_s4 }
 0x59b   : > { %p2128_p1 = scmp.lt.u32.totalorder %s2126_s7, %s2122_s18  ;;  %p2130_p7 = scmp.lt.u32.totalorder %s2122_s18, %s3145_s6 }
 0x59c   : > { %p2124_p0 = pnand %p2123_p10, %p3261_p4 }
 0x59d   : > { %p2129_p8 = por %p2128_p1, %p2127_p9 }
 0x59e   : > { %p2125_p6 = pneg %p2124_p0 }
 0x59f   : > { %p2131_p2 = por %p2130_p7, %p2129_p8 }
 0x5a1   : > { %p2132_p3 = pnand %p2131_p2, %p2125_p6 }
 0x5a3   : > { %2135 = shalt.err (!%p2132_p3)
}
 0x5a4   : > { %1779 = dma.vmem_to_hbm [thread:$0]  (%p3261_p4), %s3147_s20, 128, %s3145_s6, %s1458_s21  }
 0x5a5 PF: > { %p1793_p11 = scmp.ge.s32.totalorder %s2234_s25, 2  ;;  %s1485_s0 = sand.u32 1, %s2194_s15  }
 0x5a6   : > { %p3262_p13 = scmp.ne.s32.totalorder %s3229_s14, 0  ;;  %s1486_s27 = scalar_lea.sflag [#allocation5], %s1485_s0 }
 0x5a8   : > { %p1789_p5 = pnand %p1793_p11, %p3262_p13 }
 0x5aa   : > { %2189 = dma.done.wait (!%p1789_p5), %s1486_s27, 128  }
 0x5ab   : > { %2191 = vsyncadd (!%p1789_p5), %s1486_s27, 4294967168  ;;  %s23_s25 = sadd.s32 1, %s2234_s25   ;;  %s3263_s11 = sld [smem:[#allocation12_spill]] }
 0x5ac   : > { %p20_p12 = scmp.ge.s32.totalorder %s23_s25, 6   ;;  %s3264_s20 = sld [smem:[#allocation16_spill]] }
 0x5ad   : > { %s3265_s21 = sld [smem:[#allocation13_spill]]  ;;  %s3266_s23 = sld [smem:[#allocation14_spill]] }
 0x5ae   : > { %s3267_s26 = sld [smem:[#allocation15_spill]]  ;;  %s3268_s15 = smov %s2198_s16 }
 0x5af   : > { %s3269_s16 = smov %s2202_s17  ;;  %s3270_s17 = smov %s2359_s13 }
 0x5b0   : > { %s3271_s18 = smov %s2210_s19  ;;  %s3273_s22 = smov %s2230_s24 }
 0x5b1   : > { %s3272_s19 = smov %s3263_s11  ;;  %22 = sbr.rel (!%p20_p12) target bundleno = 13 (0xd), region = 97 }
 0x5b4   : > { %s3274_s24 = smov %s3267_s26 }
 0x5b8   :  { %1491 = vsyncpa [#allocation4], 1 }
 0x5b9   :  { %1493 = vsyncpa [#allocation4 + $0x1], 1 }
 0x5ba   :  { %1494 = vsyncpa [#allocation7], 1 }
 0x5bb   :  { %1496 = vsyncpa [#allocation7 + $0x1], 1 }
 0x5bc   :  { %1497 = vsyncpa [#allocation5], 1 }
 0x5bd   :  { %1499 = vsyncpa [#allocation5 + $0x1], 1 }

</bundles_post_ra>
